<compile_context>
chip_gen: v7x
topology: tpu7x:2x2x1
jax: 0.10.0
libtpu: 0.0.40
codegen_flags: <defaults>
</compile_context>

<pallas_src>
import jax
import jax.numpy as jnp
from jax import lax
from jax.experimental import pallas as pl
from jax.experimental.pallas import tpu as pltpu

K = 7          # kernel size
DIL = 2        # dilation
PAD = 6        # padding: H + 2*6 - (1 + (7-1)*2) + 1 = H  -> "same" size
ROW_STRIP = 8  # output rows per conv strip (keeps the live set inside vregs)


def _spatial_recon_kernel(w_ref, b_ref, x_ref, o_ref, acc_ref, pad_ref):
    # w_ref  : (49,)        SMEM (scalar prefetch) — conv taps pre-scaled by 1/C
    # b_ref  : (1,)         SMEM (scalar prefetch) — conv bias
    # x_ref  : (1, tc, H*W) VMEM — lane-dense channel tile (bf16 or f32)
    # o_ref  : (1, 1, H, W) VMEM
    # acc_ref: (1, H*W)     VMEM f32 — aligned, lane-dense channel-sum accumulator
    # pad_ref: (H+12, W+12) VMEM f32 — zero-bordered conv plane (filled once per n)
    H, W = o_ref.shape[2], o_ref.shape[3]
    c = pl.program_id(1)
    last_c = pl.num_programs(1) - 1

    # --- hot per-C-step path: full-vreg reduce + aligned flat accumulate ----
    xs = jnp.sum(x_ref[0].astype(jnp.float32), axis=0, keepdims=True)  # (1, H*W)

    @pl.when(c == 0)
    def _():
        acc_ref[...] = xs                           # "=" avoids a zero-init pass
        pad_ref[...] = jnp.zeros_like(pad_ref)      # zero border, once per n

    @pl.when(c > 0)
    def _():
        acc_ref[...] = acc_ref[...] + xs

    # --- once-per-batch-element epilogue: dilated conv + SiLU gate ----------
    @pl.when(c == last_c)
    def _():
        # Misaligned interior splat: once per n instead of once per C step.
        for h in range(H):
            pad_ref[PAD + h, PAD:PAD + W] = acc_ref[0, h * W:(h + 1) * W]

        taps = [w_ref[i] for i in range(K * K)]     # SMEM scalar reads, hoisted
        bias = b_ref[0]

        # Row-stripped 49-tap dilated conv: strip-sized column views keep the
        # lane shifts hoisted and the live set in vregs; 4 accumulator chains
        # for VALU ILP.
        for h0 in range(0, H, ROW_STRIP):
            rs = min(ROW_STRIP, H - h0)
            strip = pad_ref[h0:h0 + rs + 2 * PAD, :]                  # (rs+12, Wp)
            cols = [strip[:, DIL * kj:DIL * kj + W] for kj in range(K)]
            accs = [jnp.full((rs, W), bias, jnp.float32),
                    jnp.zeros((rs, W), jnp.float32),
                    jnp.zeros((rs, W), jnp.float32),
                    jnp.zeros((rs, W), jnp.float32)]
            t = 0
            for kj in range(K):
                mc = cols[kj]
                for ki in range(K):
                    accs[t % 4] = accs[t % 4] + taps[ki * K + kj] * mc[DIL * ki:DIL * ki + rs, :]
                    t += 1
            y = (accs[0] + accs[1]) + (accs[2] + accs[3])
            # TODO(synk): nn.Dropout(p=0.5) is identity in eval mode; training-mode
            # stochastic masking (pltpu.prng_*) intentionally not implemented.
            y = jax.nn.sigmoid(y) * y
            o_ref[0, 0, h0:h0 + rs, :] = y.astype(o_ref.dtype)


def _round_up(a, b):
    return -(-a // b) * b


def _padded_block_bytes(rows, cols, itemsize):
    """VMEM footprint of a 2-D (rows, cols) tile incl. (8,128) dtype-packed padding."""
    sub = 8 * max(4 // itemsize, 1)
    return _round_up(max(rows, 1), sub) * _round_up(max(cols, 1), 128) * itemsize


def _physical_vmem_bytes():
    try:
        info = pltpu.get_tpu_info()
        v = int(getattr(info, "vmem_capacity_bytes", 0))
        if v > 0:
            return v
    except Exception:
        pass
    return 64 << 20   # conservative fallback (v7x-sized VMEM)


def spatial_reconstruction(x, weight, bias, *, stream_dtype=jnp.bfloat16,
                           max_channels_per_step=None, vmem_budget_bytes=None):
    """x: (N, C, H, W); weight: (7, 7) f32; bias: scalar f32 -> (N, 1, H, W)."""
    N, C, H, W = x.shape
    HW = H * W
    Hp, Wp = H + 2 * PAD, W + 2 * PAD
    out_dtype = x.dtype

    # [lane-dense] + [bf16 stream]: contiguous reshape + cast at the boundary.
    xs = x.reshape(N, C, HW)
    if stream_dtype is not None:
        xs = xs.astype(stream_dtype)
    itemsize = jnp.dtype(xs.dtype).itemsize
    out_itemsize = jnp.dtype(out_dtype).itemsize

    # [VMEM budget] per-generation cap: ~32 MiB on v7x (64 MiB physical),
    # ~48 MiB on v5e/v6e (128 MiB physical).
    phys = _physical_vmem_bytes()
    vmem_cap = min(48 << 20, phys // 2)
    budget = vmem_budget_bytes if vmem_budget_bytes is not None else vmem_cap

    out_block = _padded_block_bytes(H, W, out_itemsize)
    scratch_bytes = (_padded_block_bytes(1, HW, 4)        # flat channel-sum accum
                     + _padded_block_bytes(Hp, Wp, 4))    # zero-bordered conv plane
    fixed = 2 * out_block + scratch_bytes + (1 << 20)     # dbuf out + scratch + slack
    in_budget = max(budget - fixed, 2 * _padded_block_bytes(1, HW, itemsize))

    # Largest channel tile (divisor of C, (8,*)-aligned or full C) whose
    # double-buffered, tile-padded input block fits the budget.
    tc = 1
    for d in range(C, 0, -1):
        if C % d:
            continue
        if max_channels_per_step is not None and d > max_channels_per_step:
            continue
        if not (d == C or d % 8 == 0):
            continue   # keep the second-minor block dim (8,128)-friendly
        if 2 * _padded_block_bytes(d, HW, itemsize) <= in_budget:
            tc = d
            break
    num_c = C // tc

    need = 2 * _padded_block_bytes(tc, HW, itemsize) + fixed
    vmem_limit = int(min(max(need, 16 << 20), vmem_cap))
    if need > vmem_limit:   # single block larger than the per-gen cap: let Mosaic try
        vmem_limit = int(min(need, phys))

    # Fold the channel-mean 1/C into the conv taps (wrapper-side, free).
    w_flat = (weight.astype(jnp.float32) / float(C)).reshape(K * K)
    b_flat = jnp.reshape(bias.astype(jnp.float32), (1,))

    return pl.pallas_call(
        _spatial_recon_kernel,
        out_shape=jax.ShapeDtypeStruct((N, 1, H, W), out_dtype),
        grid_spec=pltpu.PrefetchScalarGridSpec(
            num_scalar_prefetch=2,               # conv taps + bias land in SMEM
            grid=(N, num_c),
            in_specs=[
                # NOTE: add pipeline_mode=pl.Buffered(3) here only if profiling
                # shows exposed DMA under the once-per-n conv epilogue.
                pl.BlockSpec((1, tc, HW), lambda n, c, w, b: (n, c, 0)),
            ],
            out_specs=pl.BlockSpec((1, 1, H, W), lambda n, c, w, b: (n, 0, 0, 0)),
            scratch_shapes=[pltpu.VMEM((1, HW), jnp.float32),
                            pltpu.VMEM((Hp, Wp), jnp.float32)],
        ),
        compiler_params=pltpu.CompilerParams(
            dimension_semantics=("parallel", "arbitrary"),
            vmem_limit_bytes=vmem_limit,
        ),
    )(w_flat, b_flat, xs)


def _reference(x, weight, bias):
    # pure-JAX reference (eval-mode dropout = identity)
    avg = jnp.mean(x.astype(jnp.float32), axis=1, keepdims=True)      # (N,1,H,W)
    y = lax.conv_general_dilated(
        avg, weight.reshape(1, 1, K, K).astype(jnp.float32),
        window_strides=(1, 1),
        padding=((PAD, PAD), (PAD, PAD)),
        rhs_dilation=(DIL, DIL),
        dimension_numbers=("NCHW", "OIHW", "NCHW"),
    ) + bias
    return jax.nn.sigmoid(y) * y


if __name__ == "__main__":
    key = jax.random.PRNGKey(0)
    kx, kw, kb, kx2 = jax.random.split(key, 4)

    # deterministic params (Conv2d(1,1,7): fan_in = 1*7*7 = 49)
    bound = 1.0 / (49.0 ** 0.5)
    weight = jax.random.uniform(kw, (K, K), jnp.float32, -bound, bound)
    bias = jax.random.uniform(kb, (), jnp.float32, -bound, bound)

    # Case 1: small module-consistent shape, default bf16 streaming.
    N, C, H, W = 2, 4, 16, 16
    x = jax.random.normal(kx, (N, C, H, W), dtype=jnp.float32)
    out = jax.block_until_ready(spatial_reconstruction(x, weight, bias))
    ref = _reference(x.astype(jnp.bfloat16).astype(jnp.float32), weight, bias)
    assert out.shape == (N, 1, H, W)
    assert jnp.allclose(out, ref, atol=1e-4, rtol=1e-4)

    # Case 1b: exact-f32 streaming path (bit-for-bit module semantics).
    out_f32 = jax.block_until_ready(
        spatial_reconstruction(x, weight, bias, stream_dtype=None))
    ref_f32 = _reference(x, weight, bias)
    assert jnp.allclose(out_f32, ref_f32, atol=3e-5, rtol=3e-5)

    # Case 2: force the tiled C-reduction path (tc=8, two grid steps along C).
    x2 = jax.random.normal(kx2, (2, 16, 16, 16), dtype=jnp.float32)
    out2 = jax.block_until_ready(
        spatial_reconstruction(x2, weight, bias, max_channels_per_step=8))
    ref2 = _reference(x2.astype(jnp.bfloat16).astype(jnp.float32), weight, bias)
    assert out2.shape == (2, 1, 16, 16)
    assert jnp.allclose(out2, ref2, atol=1e-4, rtol=1e-4)

    print("KERNEL_OK")
</pallas_src>

<mosaic_0001>
module attributes {stable_mosaic.version = 11 : i64} {
  func.func @_spatial_recon_kernel(%arg0: i32, %arg1: i32, %arg2: memref<49xf32, #tpu.memory_space<smem>>, %arg3: memref<1xf32, #tpu.memory_space<smem>>, %arg4: memref<1x4x256xbf16, #tpu.memory_space<vmem>>, %arg5: memref<1x1x16x16xf32, #tpu.memory_space<vmem>>, %arg6: memref<1x256xf32, #tpu.memory_space<vmem>>, %arg7: memref<28x28xf32, #tpu.memory_space<vmem>>) attributes {dimension_semantics = [#tpu.dimension_semantics<parallel>, #tpu.dimension_semantics<arbitrary>], iteration_bounds = array<i64: 2, 1>, scalar_prefetch = 2 : i64, scratch_operands = 2 : i64, tpu.core_type = #tpu.core_type<tc>, window_params = [{transform_indices = @transform_0, window_bounds = array<i64: 1, 4, 256>}, {transform_indices = @transform_1, window_bounds = array<i64: 1, 1, 16, 16>}]} {
    %c0 = arith.constant 0 : index
    %c0_0 = arith.constant 0 : index
    %c0_1 = arith.constant 0 : index
    %0 = vector.load %arg4[%c0, %c0_0, %c0_1] : memref<1x4x256xbf16, #tpu.memory_space<vmem>>, vector<1x4x256xbf16>
    %1 = vector.shape_cast %0 : vector<1x4x256xbf16> to vector<4x256xbf16>
    %2 = arith.extf %1 : vector<4x256xbf16> to vector<4x256xf32>
    %cst = arith.constant dense<0.000000e+00> : vector<256xf32>
    %3 = vector.multi_reduction <add>, %2, %cst [0] : vector<4x256xf32> to vector<256xf32>
    %4 = vector.shape_cast %3 : vector<256xf32> to vector<1x256xf32>
    %c0_i32 = arith.constant 0 : i32
    %5 = arith.cmpi eq, %arg1, %c0_i32 : i32
    %6 = arith.extui %5 : i1 to i32
    %c0_i32_2 = arith.constant 0 : i32
    %7 = arith.cmpi ne, %6, %c0_i32_2 : i32
    scf.if %7 {
      %c0_7 = arith.constant 0 : index
      %c0_8 = arith.constant 0 : index
      %14 = vector.load %arg6[%c0_7, %c0_8] : memref<1x256xf32, #tpu.memory_space<vmem>>, vector<1x256xf32>
      tpu.vector_store %arg6[%c0_7, %c0_8], %4 {strides = array<i32>} : memref<1x256xf32, #tpu.memory_space<vmem>>, vector<1x256xf32>,
      %cst_9 = arith.constant 0.000000e+00 : f32
      %15 = vector.broadcast %cst_9 : f32 to vector<28x28xf32>
      %c0_10 = arith.constant 0 : index
      %c0_11 = arith.constant 0 : index
      %16 = vector.load %arg7[%c0_10, %c0_11] : memref<28x28xf32, #tpu.memory_space<vmem>>, vector<28x28xf32>
      tpu.vector_store %arg7[%c0_10, %c0_11], %15 {strides = array<i32>} : memref<28x28xf32, #tpu.memory_space<vmem>>, vector<28x28xf32>,
    } else {
    }
    %c0_i32_3 = arith.constant 0 : i32
    %8 = arith.cmpi sgt, %arg1, %c0_i32_3 : i32
    %9 = arith.extui %8 : i1 to i32
    %c0_i32_4 = arith.constant 0 : i32
    %10 = arith.cmpi ne, %9, %c0_i32_4 : i32
    scf.if %10 {
      %c0_7 = arith.constant 0 : index
      %c0_8 = arith.constant 0 : index
      %14 = vector.load %arg6[%c0_7, %c0_8] : memref<1x256xf32, #tpu.memory_space<vmem>>, vector<1x256xf32>
      %15 = arith.addf %14, %4 : vector<1x256xf32>
      %c0_9 = arith.constant 0 : index
      %c0_10 = arith.constant 0 : index
      %16 = vector.load %arg6[%c0_9, %c0_10] : memref<1x256xf32, #tpu.memory_space<vmem>>, vector<1x256xf32>
      tpu.vector_store %arg6[%c0_9, %c0_10], %15 {strides = array<i32>} : memref<1x256xf32, #tpu.memory_space<vmem>>, vector<1x256xf32>,
    } else {
    }
    %c0_i32_5 = arith.constant 0 : i32
    %11 = arith.cmpi eq, %arg1, %c0_i32_5 : i32
    %12 = arith.extui %11 : i1 to i32
    %c0_i32_6 = arith.constant 0 : i32
    %13 = arith.cmpi ne, %12, %c0_i32_6 : i32
    scf.if %13 {
      %c0_7 = arith.constant 0 : index
      %c0_8 = arith.constant 0 : index
      %14 = vector.load %arg6[%c0_7, %c0_8] : memref<1x256xf32, #tpu.memory_space<vmem>>, vector<1x16xf32>
      %15 = vector.shape_cast %14 : vector<1x16xf32> to vector<16xf32>
      %c6 = arith.constant 6 : index
      %c6_9 = arith.constant 6 : index
      %16 = vector.load %arg7[%c6, %c6_9] : memref<28x28xf32, #tpu.memory_space<vmem>>, vector<1x16xf32>
      %17 = vector.shape_cast %16 : vector<1x16xf32> to vector<16xf32>
      %18 = vector.shape_cast %15 : vector<16xf32> to vector<1x16xf32>
      tpu.vector_store %arg7[%c6, %c6_9], %18 {strides = array<i32>} : memref<28x28xf32, #tpu.memory_space<vmem>>, vector<1x16xf32>,
      %c0_10 = arith.constant 0 : index
      %c16 = arith.constant 16 : index
      %19 = vector.load %arg6[%c0_10, %c16] : memref<1x256xf32, #tpu.memory_space<vmem>>, vector<1x16xf32>
      %20 = vector.shape_cast %19 : vector<1x16xf32> to vector<16xf32>
      %c7 = arith.constant 7 : index
      %c6_11 = arith.constant 6 : index
      %21 = vector.load %arg7[%c7, %c6_11] : memref<28x28xf32, #tpu.memory_space<vmem>>, vector<1x16xf32>
      %22 = vector.shape_cast %21 : vector<1x16xf32> to vector<16xf32>
      %23 = vector.shape_cast %20 : vector<16xf32> to vector<1x16xf32>
      tpu.vector_store %arg7[%c7, %c6_11], %23 {strides = array<i32>} : memref<28x28xf32, #tpu.memory_space<vmem>>, vector<1x16xf32>,
      %c0_12 = arith.constant 0 : index
      %c32 = arith.constant 32 : index
      %24 = vector.load %arg6[%c0_12, %c32] : memref<1x256xf32, #tpu.memory_space<vmem>>, vector<1x16xf32>
      %25 = vector.shape_cast %24 : vector<1x16xf32> to vector<16xf32>
      %c8 = arith.constant 8 : index
      %c6_13 = arith.constant 6 : index
      %26 = vector.load %arg7[%c8, %c6_13] : memref<28x28xf32, #tpu.memory_space<vmem>>, vector<1x16xf32>
      %27 = vector.shape_cast %26 : vector<1x16xf32> to vector<16xf32>
      %28 = vector.shape_cast %25 : vector<16xf32> to vector<1x16xf32>
      tpu.vector_store %arg7[%c8, %c6_13], %28 {strides = array<i32>} : memref<28x28xf32, #tpu.memory_space<vmem>>, vector<1x16xf32>,
      %c0_14 = arith.constant 0 : index
      %c48 = arith.constant 48 : index
      %29 = vector.load %arg6[%c0_14, %c48] : memref<1x256xf32, #tpu.memory_space<vmem>>, vector<1x16xf32>
      %30 = vector.shape_cast %29 : vector<1x16xf32> to vector<16xf32>
      %c9 = arith.constant 9 : index
      %c6_15 = arith.constant 6 : index
      %31 = vector.load %arg7[%c9, %c6_15] : memref<28x28xf32, #tpu.memory_space<vmem>>, vector<1x16xf32>
      %32 = vector.shape_cast %31 : vector<1x16xf32> to vector<16xf32>
      %33 = vector.shape_cast %30 : vector<16xf32> to vector<1x16xf32>
      tpu.vector_store %arg7[%c9, %c6_15], %33 {strides = array<i32>} : memref<28x28xf32, #tpu.memory_space<vmem>>, vector<1x16xf32>,
      %c0_16 = arith.constant 0 : index
      %c64 = arith.constant 64 : index
      %34 = vector.load %arg6[%c0_16, %c64] : memref<1x256xf32, #tpu.memory_space<vmem>>, vector<1x16xf32>
      %35 = vector.shape_cast %34 : vector<1x16xf32> to vector<16xf32>
      %c10 = arith.constant 10 : index
      %c6_17 = arith.constant 6 : index
      %36 = vector.load %arg7[%c10, %c6_17] : memref<28x28xf32, #tpu.memory_space<vmem>>, vector<1x16xf32>
      %37 = vector.shape_cast %36 : vector<1x16xf32> to vector<16xf32>
      %38 = vector.shape_cast %35 : vector<16xf32> to vector<1x16xf32>
      tpu.vector_store %arg7[%c10, %c6_17], %38 {strides = array<i32>} : memref<28x28xf32, #tpu.memory_space<vmem>>, vector<1x16xf32>,
      %c0_18 = arith.constant 0 : index
      %c80 = arith.constant 80 : index
      %39 = vector.load %arg6[%c0_18, %c80] : memref<1x256xf32, #tpu.memory_space<vmem>>, vector<1x16xf32>
      %40 = vector.shape_cast %39 : vector<1x16xf32> to vector<16xf32>
      %c11 = arith.constant 11 : index
      %c6_19 = arith.constant 6 : index
      %41 = vector.load %arg7[%c11, %c6_19] : memref<28x28xf32, #tpu.memory_space<vmem>>, vector<1x16xf32>
      %42 = vector.shape_cast %41 : vector<1x16xf32> to vector<16xf32>
      %43 = vector.shape_cast %40 : vector<16xf32> to vector<1x16xf32>
      tpu.vector_store %arg7[%c11, %c6_19], %43 {strides = array<i32>} : memref<28x28xf32, #tpu.memory_space<vmem>>, vector<1x16xf32>,
      %c0_20 = arith.constant 0 : index
      %c96 = arith.constant 96 : index
      %44 = vector.load %arg6[%c0_20, %c96] : memref<1x256xf32, #tpu.memory_space<vmem>>, vector<1x16xf32>
      %45 = vector.shape_cast %44 : vector<1x16xf32> to vector<16xf32>
      %c12 = arith.constant 12 : index
      %c6_21 = arith.constant 6 : index
      %46 = vector.load %arg7[%c12, %c6_21] : memref<28x28xf32, #tpu.memory_space<vmem>>, vector<1x16xf32>
      %47 = vector.shape_cast %46 : vector<1x16xf32> to vector<16xf32>
      %48 = vector.shape_cast %45 : vector<16xf32> to vector<1x16xf32>
      tpu.vector_store %arg7[%c12, %c6_21], %48 {strides = array<i32>} : memref<28x28xf32, #tpu.memory_space<vmem>>, vector<1x16xf32>,
      %c0_22 = arith.constant 0 : index
      %c112 = arith.constant 112 : index
      %49 = vector.load %arg6[%c0_22, %c112] : memref<1x256xf32, #tpu.memory_space<vmem>>, vector<1x16xf32>
      %50 = vector.shape_cast %49 : vector<1x16xf32> to vector<16xf32>
      %c13 = arith.constant 13 : index
      %c6_23 = arith.constant 6 : index
      %51 = vector.load %arg7[%c13, %c6_23] : memref<28x28xf32, #tpu.memory_space<vmem>>, vector<1x16xf32>
      %52 = vector.shape_cast %51 : vector<1x16xf32> to vector<16xf32>
      %53 = vector.shape_cast %50 : vector<16xf32> to vector<1x16xf32>
      tpu.vector_store %arg7[%c13, %c6_23], %53 {strides = array<i32>} : memref<28x28xf32, #tpu.memory_space<vmem>>, vector<1x16xf32>,
      %c0_24 = arith.constant 0 : index
      %c128 = arith.constant 128 : index
      %54 = vector.load %arg6[%c0_24, %c128] : memref<1x256xf32, #tpu.memory_space<vmem>>, vector<1x16xf32>
      %55 = vector.shape_cast %54 : vector<1x16xf32> to vector<16xf32>
      %c14 = arith.constant 14 : index
      %c6_25 = arith.constant 6 : index
      %56 = vector.load %arg7[%c14, %c6_25] : memref<28x28xf32, #tpu.memory_space<vmem>>, vector<1x16xf32>
      %57 = vector.shape_cast %56 : vector<1x16xf32> to vector<16xf32>
      %58 = vector.shape_cast %55 : vector<16xf32> to vector<1x16xf32>
      tpu.vector_store %arg7[%c14, %c6_25], %58 {strides = array<i32>} : memref<28x28xf32, #tpu.memory_space<vmem>>, vector<1x16xf32>,
      %c0_26 = arith.constant 0 : index
      %c144 = arith.constant 144 : index
      %59 = vector.load %arg6[%c0_26, %c144] : memref<1x256xf32, #tpu.memory_space<vmem>>, vector<1x16xf32>
      %60 = vector.shape_cast %59 : vector<1x16xf32> to vector<16xf32>
      %c15 = arith.constant 15 : index
      %c6_27 = arith.constant 6 : index
      %61 = vector.load %arg7[%c15, %c6_27] : memref<28x28xf32, #tpu.memory_space<vmem>>, vector<1x16xf32>
      %62 = vector.shape_cast %61 : vector<1x16xf32> to vector<16xf32>
      %63 = vector.shape_cast %60 : vector<16xf32> to vector<1x16xf32>
      tpu.vector_store %arg7[%c15, %c6_27], %63 {strides = array<i32>} : memref<28x28xf32, #tpu.memory_space<vmem>>, vector<1x16xf32>,
      %c0_28 = arith.constant 0 : index
      %c160 = arith.constant 160 : index
      %64 = vector.load %arg6[%c0_28, %c160] : memref<1x256xf32, #tpu.memory_space<vmem>>, vector<1x16xf32>
      %65 = vector.shape_cast %64 : vector<1x16xf32> to vector<16xf32>
      %c16_29 = arith.constant 16 : index
      %c6_30 = arith.constant 6 : index
      %66 = vector.load %arg7[%c16_29, %c6_30] : memref<28x28xf32, #tpu.memory_space<vmem>>, vector<1x16xf32>
      %67 = vector.shape_cast %66 : vector<1x16xf32> to vector<16xf32>
      %68 = vector.shape_cast %65 : vector<16xf32> to vector<1x16xf32>
      tpu.vector_store %arg7[%c16_29, %c6_30], %68 {strides = array<i32>} : memref<28x28xf32, #tpu.memory_space<vmem>>, vector<1x16xf32>,
      %c0_31 = arith.constant 0 : index
      %c176 = arith.constant 176 : index
      %69 = vector.load %arg6[%c0_31, %c176] : memref<1x256xf32, #tpu.memory_space<vmem>>, vector<1x16xf32>
      %70 = vector.shape_cast %69 : vector<1x16xf32> to vector<16xf32>
      %c17 = arith.constant 17 : index
      %c6_32 = arith.constant 6 : index
      %71 = vector.load %arg7[%c17, %c6_32] : memref<28x28xf32, #tpu.memory_space<vmem>>, vector<1x16xf32>
      %72 = vector.shape_cast %71 : vector<1x16xf32> to vector<16xf32>
      %73 = vector.shape_cast %70 : vector<16xf32> to vector<1x16xf32>
      tpu.vector_store %arg7[%c17, %c6_32], %73 {strides = array<i32>} : memref<28x28xf32, #tpu.memory_space<vmem>>, vector<1x16xf32>,
      %c0_33 = arith.constant 0 : index
      %c192 = arith.constant 192 : index
      %74 = vector.load %arg6[%c0_33, %c192] : memref<1x256xf32, #tpu.memory_space<vmem>>, vector<1x16xf32>
      %75 = vector.shape_cast %74 : vector<1x16xf32> to vector<16xf32>
      %c18 = arith.constant 18 : index
      %c6_34 = arith.constant 6 : index
      %76 = vector.load %arg7[%c18, %c6_34] : memref<28x28xf32, #tpu.memory_space<vmem>>, vector<1x16xf32>
      %77 = vector.shape_cast %76 : vector<1x16xf32> to vector<16xf32>
      %78 = vector.shape_cast %75 : vector<16xf32> to vector<1x16xf32>
      tpu.vector_store %arg7[%c18, %c6_34], %78 {strides = array<i32>} : memref<28x28xf32, #tpu.memory_space<vmem>>, vector<1x16xf32>,
      %c0_35 = arith.constant 0 : index
      %c208 = arith.constant 208 : index
      %79 = vector.load %arg6[%c0_35, %c208] : memref<1x256xf32, #tpu.memory_space<vmem>>, vector<1x16xf32>
      %80 = vector.shape_cast %79 : vector<1x16xf32> to vector<16xf32>
      %c19 = arith.constant 19 : index
      %c6_36 = arith.constant 6 : index
      %81 = vector.load %arg7[%c19, %c6_36] : memref<28x28xf32, #tpu.memory_space<vmem>>, vector<1x16xf32>
      %82 = vector.shape_cast %81 : vector<1x16xf32> to vector<16xf32>
      %83 = vector.shape_cast %80 : vector<16xf32> to vector<1x16xf32>
      tpu.vector_store %arg7[%c19, %c6_36], %83 {strides = array<i32>} : memref<28x28xf32, #tpu.memory_space<vmem>>, vector<1x16xf32>,
      %c0_37 = arith.constant 0 : index
      %c224 = arith.constant 224 : index
      %84 = vector.load %arg6[%c0_37, %c224] : memref<1x256xf32, #tpu.memory_space<vmem>>, vector<1x16xf32>
      %85 = vector.shape_cast %84 : vector<1x16xf32> to vector<16xf32>
      %c20 = arith.constant 20 : index
      %c6_38 = arith.constant 6 : index
      %86 = vector.load %arg7[%c20, %c6_38] : memref<28x28xf32, #tpu.memory_space<vmem>>, vector<1x16xf32>
      %87 = vector.shape_cast %86 : vector<1x16xf32> to vector<16xf32>
      %88 = vector.shape_cast %85 : vector<16xf32> to vector<1x16xf32>
      tpu.vector_store %arg7[%c20, %c6_38], %88 {strides = array<i32>} : memref<28x28xf32, #tpu.memory_space<vmem>>, vector<1x16xf32>,
      %c0_39 = arith.constant 0 : index
      %c240 = arith.constant 240 : index
      %89 = vector.load %arg6[%c0_39, %c240] : memref<1x256xf32, #tpu.memory_space<vmem>>, vector<1x16xf32>
      %90 = vector.shape_cast %89 : vector<1x16xf32> to vector<16xf32>
      %c21 = arith.constant 21 : index
      %c6_40 = arith.constant 6 : index
      %91 = vector.load %arg7[%c21, %c6_40] : memref<28x28xf32, #tpu.memory_space<vmem>>, vector<1x16xf32>
      %92 = vector.shape_cast %91 : vector<1x16xf32> to vector<16xf32>
      %93 = vector.shape_cast %90 : vector<16xf32> to vector<1x16xf32>
      tpu.vector_store %arg7[%c21, %c6_40], %93 {strides = array<i32>} : memref<28x28xf32, #tpu.memory_space<vmem>>, vector<1x16xf32>,
      %c0_41 = arith.constant 0 : index
      %94 = memref.load %arg2[%c0_41] : memref<49xf32, #tpu.memory_space<smem>>
      %c1 = arith.constant 1 : index
      %95 = memref.load %arg2[%c1] : memref<49xf32, #tpu.memory_space<smem>>
      %c2 = arith.constant 2 : index
      %96 = memref.load %arg2[%c2] : memref<49xf32, #tpu.memory_space<smem>>
      %c3 = arith.constant 3 : index
      %97 = memref.load %arg2[%c3] : memref<49xf32, #tpu.memory_space<smem>>
      %c4 = arith.constant 4 : index
      %98 = memref.load %arg2[%c4] : memref<49xf32, #tpu.memory_space<smem>>
      %c5 = arith.constant 5 : index
      %99 = memref.load %arg2[%c5] : memref<49xf32, #tpu.memory_space<smem>>
      %c6_42 = arith.constant 6 : index
      %100 = memref.load %arg2[%c6_42] : memref<49xf32, #tpu.memory_space<smem>>
      %c7_43 = arith.constant 7 : index
      %101 = memref.load %arg2[%c7_43] : memref<49xf32, #tpu.memory_space<smem>>
      %c8_44 = arith.constant 8 : index
      %102 = memref.load %arg2[%c8_44] : memref<49xf32, #tpu.memory_space<smem>>
      %c9_45 = arith.constant 9 : index
      %103 = memref.load %arg2[%c9_45] : memref<49xf32, #tpu.memory_space<smem>>
      %c10_46 = arith.constant 10 : index
      %104 = memref.load %arg2[%c10_46] : memref<49xf32, #tpu.memory_space<smem>>
      %c11_47 = arith.constant 11 : index
      %105 = memref.load %arg2[%c11_47] : memref<49xf32, #tpu.memory_space<smem>>
      %c12_48 = arith.constant 12 : index
      %106 = memref.load %arg2[%c12_48] : memref<49xf32, #tpu.memory_space<smem>>
      %c13_49 = arith.constant 13 : index
      %107 = memref.load %arg2[%c13_49] : memref<49xf32, #tpu.memory_space<smem>>
      %c14_50 = arith.constant 14 : index
      %108 = memref.load %arg2[%c14_50] : memref<49xf32, #tpu.memory_space<smem>>
      %c15_51 = arith.constant 15 : index
      %109 = memref.load %arg2[%c15_51] : memref<49xf32, #tpu.memory_space<smem>>
      %c16_52 = arith.constant 16 : index
      %110 = memref.load %arg2[%c16_52] : memref<49xf32, #tpu.memory_space<smem>>
      %c17_53 = arith.constant 17 : index
      %111 = memref.load %arg2[%c17_53] : memref<49xf32, #tpu.memory_space<smem>>
      %c18_54 = arith.constant 18 : index
      %112 = memref.load %arg2[%c18_54] : memref<49xf32, #tpu.memory_space<smem>>
      %c19_55 = arith.constant 19 : index
      %113 = memref.load %arg2[%c19_55] : memref<49xf32, #tpu.memory_space<smem>>
      %c20_56 = arith.constant 20 : index
      %114 = memref.load %arg2[%c20_56] : memref<49xf32, #tpu.memory_space<smem>>
      %c21_57 = arith.constant 21 : index
      %115 = memref.load %arg2[%c21_57] : memref<49xf32, #tpu.memory_space<smem>>
      %c22 = arith.constant 22 : index
      %116 = memref.load %arg2[%c22] : memref<49xf32, #tpu.memory_space<smem>>
      %c23 = arith.constant 23 : index
      %117 = memref.load %arg2[%c23] : memref<49xf32, #tpu.memory_space<smem>>
      %c24 = arith.constant 24 : index
      %118 = memref.load %arg2[%c24] : memref<49xf32, #tpu.memory_space<smem>>
      %c25 = arith.constant 25 : index
      %119 = memref.load %arg2[%c25] : memref<49xf32, #tpu.memory_space<smem>>
      %c26 = arith.constant 26 : index
      %120 = memref.load %arg2[%c26] : memref<49xf32, #tpu.memory_space<smem>>
      %c27 = arith.constant 27 : index
      %121 = memref.load %arg2[%c27] : memref<49xf32, #tpu.memory_space<smem>>
      %c28 = arith.constant 28 : index
      %122 = memref.load %arg2[%c28] : memref<49xf32, #tpu.memory_space<smem>>
      %c29 = arith.constant 29 : index
      %123 = memref.load %arg2[%c29] : memref<49xf32, #tpu.memory_space<smem>>
      %c30 = arith.constant 30 : index
      %124 = memref.load %arg2[%c30] : memref<49xf32, #tpu.memory_space<smem>>
      %c31 = arith.constant 31 : index
      %125 = memref.load %arg2[%c31] : memref<49xf32, #tpu.memory_space<smem>>
      %c32_58 = arith.constant 32 : index
      %126 = memref.load %arg2[%c32_58] : memref<49xf32, #tpu.memory_space<smem>>
      %c33 = arith.constant 33 : index
      %127 = memref.load %arg2[%c33] : memref<49xf32, #tpu.memory_space<smem>>
      %c34 = arith.constant 34 : index
      %128 = memref.load %arg2[%c34] : memref<49xf32, #tpu.memory_space<smem>>
      %c35 = arith.constant 35 : index
      %129 = memref.load %arg2[%c35] : memref<49xf32, #tpu.memory_space<smem>>
      %c36 = arith.constant 36 : index
      %130 = memref.load %arg2[%c36] : memref<49xf32, #tpu.memory_space<smem>>
      %c37 = arith.constant 37 : index
      %131 = memref.load %arg2[%c37] : memref<49xf32, #tpu.memory_space<smem>>
      %c38 = arith.constant 38 : index
      %132 = memref.load %arg2[%c38] : memref<49xf32, #tpu.memory_space<smem>>
      %c39 = arith.constant 39 : index
      %133 = memref.load %arg2[%c39] : memref<49xf32, #tpu.memory_space<smem>>
      %c40 = arith.constant 40 : index
      %134 = memref.load %arg2[%c40] : memref<49xf32, #tpu.memory_space<smem>>
      %c41 = arith.constant 41 : index
      %135 = memref.load %arg2[%c41] : memref<49xf32, #tpu.memory_space<smem>>
      %c42 = arith.constant 42 : index
      %136 = memref.load %arg2[%c42] : memref<49xf32, #tpu.memory_space<smem>>
      %c43 = arith.constant 43 : index
      %137 = memref.load %arg2[%c43] : memref<49xf32, #tpu.memory_space<smem>>
      %c44 = arith.constant 44 : index
      %138 = memref.load %arg2[%c44] : memref<49xf32, #tpu.memory_space<smem>>
      %c45 = arith.constant 45 : index
      %139 = memref.load %arg2[%c45] : memref<49xf32, #tpu.memory_space<smem>>
      %c46 = arith.constant 46 : index
      %140 = memref.load %arg2[%c46] : memref<49xf32, #tpu.memory_space<smem>>
      %c47 = arith.constant 47 : index
      %141 = memref.load %arg2[%c47] : memref<49xf32, #tpu.memory_space<smem>>
      %c48_59 = arith.constant 48 : index
      %142 = memref.load %arg2[%c48_59] : memref<49xf32, #tpu.memory_space<smem>>
      %c0_60 = arith.constant 0 : index
      %143 = memref.load %arg3[%c0_60] : memref<1xf32, #tpu.memory_space<smem>>
      %c0_61 = arith.constant 0 : index
      %c0_62 = arith.constant 0 : index
      %144 = vector.load %arg7[%c0_61, %c0_62] : memref<28x28xf32, #tpu.memory_space<vmem>>, vector<20x28xf32>
      %145 = vector.extract_strided_slice %144 {offsets = [0, 0], sizes = [20, 16], strides = [1, 1]} : vector<20x28xf32> to vector<20x16xf32>
      %146 = vector.extract_strided_slice %144 {offsets = [0, 2], sizes = [20, 16], strides = [1, 1]} : vector<20x28xf32> to vector<20x16xf32>
      %147 = vector.extract_strided_slice %144 {offsets = [0, 4], sizes = [20, 16], strides = [1, 1]} : vector<20x28xf32> to vector<20x16xf32>
      %148 = vector.extract_strided_slice %144 {offsets = [0, 6], sizes = [20, 16], strides = [1, 1]} : vector<20x28xf32> to vector<20x16xf32>
      %149 = vector.extract_strided_slice %144 {offsets = [0, 8], sizes = [20, 16], strides = [1, 1]} : vector<20x28xf32> to vector<20x16xf32>
      %150 = vector.extract_strided_slice %144 {offsets = [0, 10], sizes = [20, 16], strides = [1, 1]} : vector<20x28xf32> to vector<20x16xf32>
      %151 = vector.extract_strided_slice %144 {offsets = [0, 12], sizes = [20, 16], strides = [1, 1]} : vector<20x28xf32> to vector<20x16xf32>
      %152 = vector.broadcast %143 : f32 to vector<8x16xf32>
      %cst_63 = arith.constant 0.000000e+00 : f32
      %153 = vector.broadcast %cst_63 : f32 to vector<8x16xf32>
      %cst_64 = arith.constant 0.000000e+00 : f32
      %154 = vector.broadcast %cst_64 : f32 to vector<8x16xf32>
      %cst_65 = arith.constant 0.000000e+00 : f32
      %155 = vector.broadcast %cst_65 : f32 to vector<8x16xf32>
      %156 = vector.extract_strided_slice %145 {offsets = [0, 0], sizes = [8, 16], strides = [1, 1]} : vector<20x16xf32> to vector<8x16xf32>
      %157 = vector.broadcast %94 : f32 to vector<8x16xf32>
      %158 = arith.mulf %157, %156 : vector<8x16xf32>
      %159 = arith.addf %152, %158 : vector<8x16xf32>
      %160 = vector.extract_strided_slice %145 {offsets = [2, 0], sizes = [8, 16], strides = [1, 1]} : vector<20x16xf32> to vector<8x16xf32>
      %161 = vector.broadcast %101 : f32 to vector<8x16xf32>
      %162 = arith.mulf %161, %160 : vector<8x16xf32>
      %163 = arith.addf %153, %162 : vector<8x16xf32>
      %164 = vector.extract_strided_slice %145 {offsets = [4, 0], sizes = [8, 16], strides = [1, 1]} : vector<20x16xf32> to vector<8x16xf32>
      %165 = vector.broadcast %108 : f32 to vector<8x16xf32>
      %166 = arith.mulf %165, %164 : vector<8x16xf32>
      %167 = arith.addf %154, %166 : vector<8x16xf32>
      %168 = vector.extract_strided_slice %145 {offsets = [6, 0], sizes = [8, 16], strides = [1, 1]} : vector<20x16xf32> to vector<8x16xf32>
      %169 = vector.broadcast %115 : f32 to vector<8x16xf32>
      %170 = arith.mulf %169, %168 : vector<8x16xf32>
      %171 = arith.addf %155, %170 : vector<8x16xf32>
      %172 = vector.extract_strided_slice %145 {offsets = [8, 0], sizes = [8, 16], strides = [1, 1]} : vector<20x16xf32> to vector<8x16xf32>
      %173 = vector.broadcast %122 : f32 to vector<8x16xf32>
      %174 = arith.mulf %173, %172 : vector<8x16xf32>
      %175 = arith.addf %159, %174 : vector<8x16xf32>
      %176 = vector.extract_strided_slice %145 {offsets = [10, 0], sizes = [8, 16], strides = [1, 1]} : vector<20x16xf32> to vector<8x16xf32>
      %177 = vector.broadcast %129 : f32 to vector<8x16xf32>
      %178 = arith.mulf %177, %176 : vector<8x16xf32>
      %179 = arith.addf %163, %178 : vector<8x16xf32>
      %180 = vector.extract_strided_slice %145 {offsets = [12, 0], sizes = [8, 16], strides = [1, 1]} : vector<20x16xf32> to vector<8x16xf32>
      %181 = vector.broadcast %136 : f32 to vector<8x16xf32>
      %182 = arith.mulf %181, %180 : vector<8x16xf32>
      %183 = arith.addf %167, %182 : vector<8x16xf32>
      %184 = vector.extract_strided_slice %146 {offsets = [0, 0], sizes = [8, 16], strides = [1, 1]} : vector<20x16xf32> to vector<8x16xf32>
      %185 = vector.broadcast %95 : f32 to vector<8x16xf32>
      %186 = arith.mulf %185, %184 : vector<8x16xf32>
      %187 = arith.addf %171, %186 : vector<8x16xf32>
      %188 = vector.extract_strided_slice %146 {offsets = [2, 0], sizes = [8, 16], strides = [1, 1]} : vector<20x16xf32> to vector<8x16xf32>
      %189 = vector.broadcast %102 : f32 to vector<8x16xf32>
      %190 = arith.mulf %189, %188 : vector<8x16xf32>
      %191 = arith.addf %175, %190 : vector<8x16xf32>
      %192 = vector.extract_strided_slice %146 {offsets = [4, 0], sizes = [8, 16], strides = [1, 1]} : vector<20x16xf32> to vector<8x16xf32>
      %193 = vector.broadcast %109 : f32 to vector<8x16xf32>
      %194 = arith.mulf %193, %192 : vector<8x16xf32>
      %195 = arith.addf %179, %194 : vector<8x16xf32>
      %196 = vector.extract_strided_slice %146 {offsets = [6, 0], sizes = [8, 16], strides = [1, 1]} : vector<20x16xf32> to vector<8x16xf32>
      %197 = vector.broadcast %116 : f32 to vector<8x16xf32>
      %198 = arith.mulf %197, %196 : vector<8x16xf32>
      %199 = arith.addf %183, %198 : vector<8x16xf32>
      %200 = vector.extract_strided_slice %146 {offsets = [8, 0], sizes = [8, 16], strides = [1, 1]} : vector<20x16xf32> to vector<8x16xf32>
      %201 = vector.broadcast %123 : f32 to vector<8x16xf32>
      %202 = arith.mulf %201, %200 : vector<8x16xf32>
      %203 = arith.addf %187, %202 : vector<8x16xf32>
      %204 = vector.extract_strided_slice %146 {offsets = [10, 0], sizes = [8, 16], strides = [1, 1]} : vector<20x16xf32> to vector<8x16xf32>
      %205 = vector.broadcast %130 : f32 to vector<8x16xf32>
      %206 = arith.mulf %205, %204 : vector<8x16xf32>
      %207 = arith.addf %191, %206 : vector<8x16xf32>
      %208 = vector.extract_strided_slice %146 {offsets = [12, 0], sizes = [8, 16], strides = [1, 1]} : vector<20x16xf32> to vector<8x16xf32>
      %209 = vector.broadcast %137 : f32 to vector<8x16xf32>
      %210 = arith.mulf %209, %208 : vector<8x16xf32>
      %211 = arith.addf %195, %210 : vector<8x16xf32>
      %212 = vector.extract_strided_slice %147 {offsets = [0, 0], sizes = [8, 16], strides = [1, 1]} : vector<20x16xf32> to vector<8x16xf32>
      %213 = vector.broadcast %96 : f32 to vector<8x16xf32>
      %214 = arith.mulf %213, %212 : vector<8x16xf32>
      %215 = arith.addf %199, %214 : vector<8x16xf32>
      %216 = vector.extract_strided_slice %147 {offsets = [2, 0], sizes = [8, 16], strides = [1, 1]} : vector<20x16xf32> to vector<8x16xf32>
      %217 = vector.broadcast %103 : f32 to vector<8x16xf32>
      %218 = arith.mulf %217, %216 : vector<8x16xf32>
      %219 = arith.addf %203, %218 : vector<8x16xf32>
      %220 = vector.extract_strided_slice %147 {offsets = [4, 0], sizes = [8, 16], strides = [1, 1]} : vector<20x16xf32> to vector<8x16xf32>
      %221 = vector.broadcast %110 : f32 to vector<8x16xf32>
      %222 = arith.mulf %221, %220 : vector<8x16xf32>
      %223 = arith.addf %207, %222 : vector<8x16xf32>
      %224 = vector.extract_strided_slice %147 {offsets = [6, 0], sizes = [8, 16], strides = [1, 1]} : vector<20x16xf32> to vector<8x16xf32>
      %225 = vector.broadcast %117 : f32 to vector<8x16xf32>
      %226 = arith.mulf %225, %224 : vector<8x16xf32>
      %227 = arith.addf %211, %226 : vector<8x16xf32>
      %228 = vector.extract_strided_slice %147 {offsets = [8, 0], sizes = [8, 16], strides = [1, 1]} : vector<20x16xf32> to vector<8x16xf32>
      %229 = vector.broadcast %124 : f32 to vector<8x16xf32>
      %230 = arith.mulf %229, %228 : vector<8x16xf32>
      %231 = arith.addf %215, %230 : vector<8x16xf32>
      %232 = vector.extract_strided_slice %147 {offsets = [10, 0], sizes = [8, 16], strides = [1, 1]} : vector<20x16xf32> to vector<8x16xf32>
      %233 = vector.broadcast %131 : f32 to vector<8x16xf32>
      %234 = arith.mulf %233, %232 : vector<8x16xf32>
      %235 = arith.addf %219, %234 : vector<8x16xf32>
      %236 = vector.extract_strided_slice %147 {offsets = [12, 0], sizes = [8, 16], strides = [1, 1]} : vector<20x16xf32> to vector<8x16xf32>
      %237 = vector.broadcast %138 : f32 to vector<8x16xf32>
      %238 = arith.mulf %237, %236 : vector<8x16xf32>
      %239 = arith.addf %223, %238 : vector<8x16xf32>
      %240 = vector.extract_strided_slice %148 {offsets = [0, 0], sizes = [8, 16], strides = [1, 1]} : vector<20x16xf32> to vector<8x16xf32>
      %241 = vector.broadcast %97 : f32 to vector<8x16xf32>
      %242 = arith.mulf %241, %240 : vector<8x16xf32>
      %243 = arith.addf %227, %242 : vector<8x16xf32>
      %244 = vector.extract_strided_slice %148 {offsets = [2, 0], sizes = [8, 16], strides = [1, 1]} : vector<20x16xf32> to vector<8x16xf32>
      %245 = vector.broadcast %104 : f32 to vector<8x16xf32>
      %246 = arith.mulf %245, %244 : vector<8x16xf32>
      %247 = arith.addf %231, %246 : vector<8x16xf32>
      %248 = vector.extract_strided_slice %148 {offsets = [4, 0], sizes = [8, 16], strides = [1, 1]} : vector<20x16xf32> to vector<8x16xf32>
      %249 = vector.broadcast %111 : f32 to vector<8x16xf32>
      %250 = arith.mulf %249, %248 : vector<8x16xf32>
      %251 = arith.addf %235, %250 : vector<8x16xf32>
      %252 = vector.extract_strided_slice %148 {offsets = [6, 0], sizes = [8, 16], strides = [1, 1]} : vector<20x16xf32> to vector<8x16xf32>
      %253 = vector.broadcast %118 : f32 to vector<8x16xf32>
      %254 = arith.mulf %253, %252 : vector<8x16xf32>
      %255 = arith.addf %239, %254 : vector<8x16xf32>
      %256 = vector.extract_strided_slice %148 {offsets = [8, 0], sizes = [8, 16], strides = [1, 1]} : vector<20x16xf32> to vector<8x16xf32>
      %257 = vector.broadcast %125 : f32 to vector<8x16xf32>
      %258 = arith.mulf %257, %256 : vector<8x16xf32>
      %259 = arith.addf %243, %258 : vector<8x16xf32>
      %260 = vector.extract_strided_slice %148 {offsets = [10, 0], sizes = [8, 16], strides = [1, 1]} : vector<20x16xf32> to vector<8x16xf32>
      %261 = vector.broadcast %132 : f32 to vector<8x16xf32>
      %262 = arith.mulf %261, %260 : vector<8x16xf32>
      %263 = arith.addf %247, %262 : vector<8x16xf32>
      %264 = vector.extract_strided_slice %148 {offsets = [12, 0], sizes = [8, 16], strides = [1, 1]} : vector<20x16xf32> to vector<8x16xf32>
      %265 = vector.broadcast %139 : f32 to vector<8x16xf32>
      %266 = arith.mulf %265, %264 : vector<8x16xf32>
      %267 = arith.addf %251, %266 : vector<8x16xf32>
      %268 = vector.extract_strided_slice %149 {offsets = [0, 0], sizes = [8, 16], strides = [1, 1]} : vector<20x16xf32> to vector<8x16xf32>
      %269 = vector.broadcast %98 : f32 to vector<8x16xf32>
      %270 = arith.mulf %269, %268 : vector<8x16xf32>
      %271 = arith.addf %255, %270 : vector<8x16xf32>
      %272 = vector.extract_strided_slice %149 {offsets = [2, 0], sizes = [8, 16], strides = [1, 1]} : vector<20x16xf32> to vector<8x16xf32>
      %273 = vector.broadcast %105 : f32 to vector<8x16xf32>
      %274 = arith.mulf %273, %272 : vector<8x16xf32>
      %275 = arith.addf %259, %274 : vector<8x16xf32>
      %276 = vector.extract_strided_slice %149 {offsets = [4, 0], sizes = [8, 16], strides = [1, 1]} : vector<20x16xf32> to vector<8x16xf32>
      %277 = vector.broadcast %112 : f32 to vector<8x16xf32>
      %278 = arith.mulf %277, %276 : vector<8x16xf32>
      %279 = arith.addf %263, %278 : vector<8x16xf32>
      %280 = vector.extract_strided_slice %149 {offsets = [6, 0], sizes = [8, 16], strides = [1, 1]} : vector<20x16xf32> to vector<8x16xf32>
      %281 = vector.broadcast %119 : f32 to vector<8x16xf32>
      %282 = arith.mulf %281, %280 : vector<8x16xf32>
      %283 = arith.addf %267, %282 : vector<8x16xf32>
      %284 = vector.extract_strided_slice %149 {offsets = [8, 0], sizes = [8, 16], strides = [1, 1]} : vector<20x16xf32> to vector<8x16xf32>
      %285 = vector.broadcast %126 : f32 to vector<8x16xf32>
      %286 = arith.mulf %285, %284 : vector<8x16xf32>
      %287 = arith.addf %271, %286 : vector<8x16xf32>
      %288 = vector.extract_strided_slice %149 {offsets = [10, 0], sizes = [8, 16], strides = [1, 1]} : vector<20x16xf32> to vector<8x16xf32>
      %289 = vector.broadcast %133 : f32 to vector<8x16xf32>
      %290 = arith.mulf %289, %288 : vector<8x16xf32>
      %291 = arith.addf %275, %290 : vector<8x16xf32>
      %292 = vector.extract_strided_slice %149 {offsets = [12, 0], sizes = [8, 16], strides = [1, 1]} : vector<20x16xf32> to vector<8x16xf32>
      %293 = vector.broadcast %140 : f32 to vector<8x16xf32>
      %294 = arith.mulf %293, %292 : vector<8x16xf32>
      %295 = arith.addf %279, %294 : vector<8x16xf32>
      %296 = vector.extract_strided_slice %150 {offsets = [0, 0], sizes = [8, 16], strides = [1, 1]} : vector<20x16xf32> to vector<8x16xf32>
      %297 = vector.broadcast %99 : f32 to vector<8x16xf32>
      %298 = arith.mulf %297, %296 : vector<8x16xf32>
      %299 = arith.addf %283, %298 : vector<8x16xf32>
      %300 = vector.extract_strided_slice %150 {offsets = [2, 0], sizes = [8, 16], strides = [1, 1]} : vector<20x16xf32> to vector<8x16xf32>
      %301 = vector.broadcast %106 : f32 to vector<8x16xf32>
      %302 = arith.mulf %301, %300 : vector<8x16xf32>
      %303 = arith.addf %287, %302 : vector<8x16xf32>
      %304 = vector.extract_strided_slice %150 {offsets = [4, 0], sizes = [8, 16], strides = [1, 1]} : vector<20x16xf32> to vector<8x16xf32>
      %305 = vector.broadcast %113 : f32 to vector<8x16xf32>
      %306 = arith.mulf %305, %304 : vector<8x16xf32>
      %307 = arith.addf %291, %306 : vector<8x16xf32>
      %308 = vector.extract_strided_slice %150 {offsets = [6, 0], sizes = [8, 16], strides = [1, 1]} : vector<20x16xf32> to vector<8x16xf32>
      %309 = vector.broadcast %120 : f32 to vector<8x16xf32>
      %310 = arith.mulf %309, %308 : vector<8x16xf32>
      %311 = arith.addf %295, %310 : vector<8x16xf32>
      %312 = vector.extract_strided_slice %150 {offsets = [8, 0], sizes = [8, 16], strides = [1, 1]} : vector<20x16xf32> to vector<8x16xf32>
      %313 = vector.broadcast %127 : f32 to vector<8x16xf32>
      %314 = arith.mulf %313, %312 : vector<8x16xf32>
      %315 = arith.addf %299, %314 : vector<8x16xf32>
      %316 = vector.extract_strided_slice %150 {offsets = [10, 0], sizes = [8, 16], strides = [1, 1]} : vector<20x16xf32> to vector<8x16xf32>
      %317 = vector.broadcast %134 : f32 to vector<8x16xf32>
      %318 = arith.mulf %317, %316 : vector<8x16xf32>
      %319 = arith.addf %303, %318 : vector<8x16xf32>
      %320 = vector.extract_strided_slice %150 {offsets = [12, 0], sizes = [8, 16], strides = [1, 1]} : vector<20x16xf32> to vector<8x16xf32>
      %321 = vector.broadcast %141 : f32 to vector<8x16xf32>
      %322 = arith.mulf %321, %320 : vector<8x16xf32>
      %323 = arith.addf %307, %322 : vector<8x16xf32>
      %324 = vector.extract_strided_slice %151 {offsets = [0, 0], sizes = [8, 16], strides = [1, 1]} : vector<20x16xf32> to vector<8x16xf32>
      %325 = vector.broadcast %100 : f32 to vector<8x16xf32>
      %326 = arith.mulf %325, %324 : vector<8x16xf32>
      %327 = arith.addf %311, %326 : vector<8x16xf32>
      %328 = vector.extract_strided_slice %151 {offsets = [2, 0], sizes = [8, 16], strides = [1, 1]} : vector<20x16xf32> to vector<8x16xf32>
      %329 = vector.broadcast %107 : f32 to vector<8x16xf32>
      %330 = arith.mulf %329, %328 : vector<8x16xf32>
      %331 = arith.addf %315, %330 : vector<8x16xf32>
      %332 = vector.extract_strided_slice %151 {offsets = [4, 0], sizes = [8, 16], strides = [1, 1]} : vector<20x16xf32> to vector<8x16xf32>
      %333 = vector.broadcast %114 : f32 to vector<8x16xf32>
      %334 = arith.mulf %333, %332 : vector<8x16xf32>
      %335 = arith.addf %319, %334 : vector<8x16xf32>
      %336 = vector.extract_strided_slice %151 {offsets = [6, 0], sizes = [8, 16], strides = [1, 1]} : vector<20x16xf32> to vector<8x16xf32>
      %337 = vector.broadcast %121 : f32 to vector<8x16xf32>
      %338 = arith.mulf %337, %336 : vector<8x16xf32>
      %339 = arith.addf %323, %338 : vector<8x16xf32>
      %340 = vector.extract_strided_slice %151 {offsets = [8, 0], sizes = [8, 16], strides = [1, 1]} : vector<20x16xf32> to vector<8x16xf32>
      %341 = vector.broadcast %128 : f32 to vector<8x16xf32>
      %342 = arith.mulf %341, %340 : vector<8x16xf32>
      %343 = arith.addf %327, %342 : vector<8x16xf32>
      %344 = vector.extract_strided_slice %151 {offsets = [10, 0], sizes = [8, 16], strides = [1, 1]} : vector<20x16xf32> to vector<8x16xf32>
      %345 = vector.broadcast %135 : f32 to vector<8x16xf32>
      %346 = arith.mulf %345, %344 : vector<8x16xf32>
      %347 = arith.addf %331, %346 : vector<8x16xf32>
      %348 = vector.extract_strided_slice %151 {offsets = [12, 0], sizes = [8, 16], strides = [1, 1]} : vector<20x16xf32> to vector<8x16xf32>
      %349 = vector.broadcast %142 : f32 to vector<8x16xf32>
      %350 = arith.mulf %349, %348 : vector<8x16xf32>
      %351 = arith.addf %335, %350 : vector<8x16xf32>
      %352 = arith.addf %351, %339 : vector<8x16xf32>
      %353 = arith.addf %343, %347 : vector<8x16xf32>
      %354 = arith.addf %352, %353 : vector<8x16xf32>
      %355 = arith.negf %354 : vector<8x16xf32>
      %356 = math.exp %355 : vector<8x16xf32>
      %cst_66 = arith.constant 1.000000e+00 : f32
      %357 = vector.broadcast %cst_66 : f32 to vector<8x16xf32>
      %358 = arith.addf %357, %356 : vector<8x16xf32>
      %359 = arith.divf %357, %358 : vector<8x16xf32>
      %360 = arith.mulf %359, %354 : vector<8x16xf32>
      %c0_67 = arith.constant 0 : index
      %c0_68 = arith.constant 0 : index
      %c0_69 = arith.constant 0 : index
      %c0_70 = arith.constant 0 : index
      %361 = vector.load %arg5[%c0_67, %c0_68, %c0_69, %c0_70] : memref<1x1x16x16xf32, #tpu.memory_space<vmem>>, vector<1x1x8x16xf32>
      %362 = vector.shape_cast %361 : vector<1x1x8x16xf32> to vector<8x16xf32>
      %363 = vector.shape_cast %360 : vector<8x16xf32> to vector<1x1x8x16xf32>
      tpu.vector_store %arg5[%c0_67, %c0_68, %c0_69, %c0_70], %363 {strides = array<i32>} : memref<1x1x16x16xf32, #tpu.memory_space<vmem>>, vector<1x1x8x16xf32>,
      %c8_71 = arith.constant 8 : index
      %c0_72 = arith.constant 0 : index
      %364 = vector.load %arg7[%c8_71, %c0_72] : memref<28x28xf32, #tpu.memory_space<vmem>>, vector<20x28xf32>
      %365 = vector.extract_strided_slice %364 {offsets = [0, 0], sizes = [20, 16], strides = [1, 1]} : vector<20x28xf32> to vector<20x16xf32>
      %366 = vector.extract_strided_slice %364 {offsets = [0, 2], sizes = [20, 16], strides = [1, 1]} : vector<20x28xf32> to vector<20x16xf32>
      %367 = vector.extract_strided_slice %364 {offsets = [0, 4], sizes = [20, 16], strides = [1, 1]} : vector<20x28xf32> to vector<20x16xf32>
      %368 = vector.extract_strided_slice %364 {offsets = [0, 6], sizes = [20, 16], strides = [1, 1]} : vector<20x28xf32> to vector<20x16xf32>
      %369 = vector.extract_strided_slice %364 {offsets = [0, 8], sizes = [20, 16], strides = [1, 1]} : vector<20x28xf32> to vector<20x16xf32>
      %370 = vector.extract_strided_slice %364 {offsets = [0, 10], sizes = [20, 16], strides = [1, 1]} : vector<20x28xf32> to vector<20x16xf32>
      %371 = vector.extract_strided_slice %364 {offsets = [0, 12], sizes = [20, 16], strides = [1, 1]} : vector<20x28xf32> to vector<20x16xf32>
      %372 = vector.broadcast %143 : f32 to vector<8x16xf32>
      %cst_73 = arith.constant 0.000000e+00 : f32
      %373 = vector.broadcast %cst_73 : f32 to vector<8x16xf32>
      %cst_74 = arith.constant 0.000000e+00 : f32
      %374 = vector.broadcast %cst_74 : f32 to vector<8x16xf32>
      %cst_75 = arith.constant 0.000000e+00 : f32
      %375 = vector.broadcast %cst_75 : f32 to vector<8x16xf32>
      %376 = vector.extract_strided_slice %365 {offsets = [0, 0], sizes = [8, 16], strides = [1, 1]} : vector<20x16xf32> to vector<8x16xf32>
      %377 = vector.broadcast %94 : f32 to vector<8x16xf32>
      %378 = arith.mulf %377, %376 : vector<8x16xf32>
      %379 = arith.addf %372, %378 : vector<8x16xf32>
      %380 = vector.extract_strided_slice %365 {offsets = [2, 0], sizes = [8, 16], strides = [1, 1]} : vector<20x16xf32> to vector<8x16xf32>
      %381 = vector.broadcast %101 : f32 to vector<8x16xf32>
      %382 = arith.mulf %381, %380 : vector<8x16xf32>
      %383 = arith.addf %373, %382 : vector<8x16xf32>
      %384 = vector.extract_strided_slice %365 {offsets = [4, 0], sizes = [8, 16], strides = [1, 1]} : vector<20x16xf32> to vector<8x16xf32>
      %385 = vector.broadcast %108 : f32 to vector<8x16xf32>
      %386 = arith.mulf %385, %384 : vector<8x16xf32>
      %387 = arith.addf %374, %386 : vector<8x16xf32>
      %388 = vector.extract_strided_slice %365 {offsets = [6, 0], sizes = [8, 16], strides = [1, 1]} : vector<20x16xf32> to vector<8x16xf32>
      %389 = vector.broadcast %115 : f32 to vector<8x16xf32>
      %390 = arith.mulf %389, %388 : vector<8x16xf32>
      %391 = arith.addf %375, %390 : vector<8x16xf32>
      %392 = vector.extract_strided_slice %365 {offsets = [8, 0], sizes = [8, 16], strides = [1, 1]} : vector<20x16xf32> to vector<8x16xf32>
      %393 = vector.broadcast %122 : f32 to vector<8x16xf32>
      %394 = arith.mulf %393, %392 : vector<8x16xf32>
      %395 = arith.addf %379, %394 : vector<8x16xf32>
      %396 = vector.extract_strided_slice %365 {offsets = [10, 0], sizes = [8, 16], strides = [1, 1]} : vector<20x16xf32> to vector<8x16xf32>
      %397 = vector.broadcast %129 : f32 to vector<8x16xf32>
      %398 = arith.mulf %397, %396 : vector<8x16xf32>
      %399 = arith.addf %383, %398 : vector<8x16xf32>
      %400 = vector.extract_strided_slice %365 {offsets = [12, 0], sizes = [8, 16], strides = [1, 1]} : vector<20x16xf32> to vector<8x16xf32>
      %401 = vector.broadcast %136 : f32 to vector<8x16xf32>
      %402 = arith.mulf %401, %400 : vector<8x16xf32>
      %403 = arith.addf %387, %402 : vector<8x16xf32>
      %404 = vector.extract_strided_slice %366 {offsets = [0, 0], sizes = [8, 16], strides = [1, 1]} : vector<20x16xf32> to vector<8x16xf32>
      %405 = vector.broadcast %95 : f32 to vector<8x16xf32>
      %406 = arith.mulf %405, %404 : vector<8x16xf32>
      %407 = arith.addf %391, %406 : vector<8x16xf32>
      %408 = vector.extract_strided_slice %366 {offsets = [2, 0], sizes = [8, 16], strides = [1, 1]} : vector<20x16xf32> to vector<8x16xf32>
      %409 = vector.broadcast %102 : f32 to vector<8x16xf32>
      %410 = arith.mulf %409, %408 : vector<8x16xf32>
      %411 = arith.addf %395, %410 : vector<8x16xf32>
      %412 = vector.extract_strided_slice %366 {offsets = [4, 0], sizes = [8, 16], strides = [1, 1]} : vector<20x16xf32> to vector<8x16xf32>
      %413 = vector.broadcast %109 : f32 to vector<8x16xf32>
      %414 = arith.mulf %413, %412 : vector<8x16xf32>
      %415 = arith.addf %399, %414 : vector<8x16xf32>
      %416 = vector.extract_strided_slice %366 {offsets = [6, 0], sizes = [8, 16], strides = [1, 1]} : vector<20x16xf32> to vector<8x16xf32>
      %417 = vector.broadcast %116 : f32 to vector<8x16xf32>
      %418 = arith.mulf %417, %416 : vector<8x16xf32>
      %419 = arith.addf %403, %418 : vector<8x16xf32>
      %420 = vector.extract_strided_slice %366 {offsets = [8, 0], sizes = [8, 16], strides = [1, 1]} : vector<20x16xf32> to vector<8x16xf32>
      %421 = vector.broadcast %123 : f32 to vector<8x16xf32>
      %422 = arith.mulf %421, %420 : vector<8x16xf32>
      %423 = arith.addf %407, %422 : vector<8x16xf32>
      %424 = vector.extract_strided_slice %366 {offsets = [10, 0], sizes = [8, 16], strides = [1, 1]} : vector<20x16xf32> to vector<8x16xf32>
      %425 = vector.broadcast %130 : f32 to vector<8x16xf32>
      %426 = arith.mulf %425, %424 : vector<8x16xf32>
      %427 = arith.addf %411, %426 : vector<8x16xf32>
      %428 = vector.extract_strided_slice %366 {offsets = [12, 0], sizes = [8, 16], strides = [1, 1]} : vector<20x16xf32> to vector<8x16xf32>
      %429 = vector.broadcast %137 : f32 to vector<8x16xf32>
      %430 = arith.mulf %429, %428 : vector<8x16xf32>
      %431 = arith.addf %415, %430 : vector<8x16xf32>
      %432 = vector.extract_strided_slice %367 {offsets = [0, 0], sizes = [8, 16], strides = [1, 1]} : vector<20x16xf32> to vector<8x16xf32>
      %433 = vector.broadcast %96 : f32 to vector<8x16xf32>
      %434 = arith.mulf %433, %432 : vector<8x16xf32>
      %435 = arith.addf %419, %434 : vector<8x16xf32>
      %436 = vector.extract_strided_slice %367 {offsets = [2, 0], sizes = [8, 16], strides = [1, 1]} : vector<20x16xf32> to vector<8x16xf32>
      %437 = vector.broadcast %103 : f32 to vector<8x16xf32>
      %438 = arith.mulf %437, %436 : vector<8x16xf32>
      %439 = arith.addf %423, %438 : vector<8x16xf32>
      %440 = vector.extract_strided_slice %367 {offsets = [4, 0], sizes = [8, 16], strides = [1, 1]} : vector<20x16xf32> to vector<8x16xf32>
      %441 = vector.broadcast %110 : f32 to vector<8x16xf32>
      %442 = arith.mulf %441, %440 : vector<8x16xf32>
      %443 = arith.addf %427, %442 : vector<8x16xf32>
      %444 = vector.extract_strided_slice %367 {offsets = [6, 0], sizes = [8, 16], strides = [1, 1]} : vector<20x16xf32> to vector<8x16xf32>
      %445 = vector.broadcast %117 : f32 to vector<8x16xf32>
      %446 = arith.mulf %445, %444 : vector<8x16xf32>
      %447 = arith.addf %431, %446 : vector<8x16xf32>
      %448 = vector.extract_strided_slice %367 {offsets = [8, 0], sizes = [8, 16], strides = [1, 1]} : vector<20x16xf32> to vector<8x16xf32>
      %449 = vector.broadcast %124 : f32 to vector<8x16xf32>
      %450 = arith.mulf %449, %448 : vector<8x16xf32>
      %451 = arith.addf %435, %450 : vector<8x16xf32>
      %452 = vector.extract_strided_slice %367 {offsets = [10, 0], sizes = [8, 16], strides = [1, 1]} : vector<20x16xf32> to vector<8x16xf32>
      %453 = vector.broadcast %131 : f32 to vector<8x16xf32>
      %454 = arith.mulf %453, %452 : vector<8x16xf32>
      %455 = arith.addf %439, %454 : vector<8x16xf32>
      %456 = vector.extract_strided_slice %367 {offsets = [12, 0], sizes = [8, 16], strides = [1, 1]} : vector<20x16xf32> to vector<8x16xf32>
      %457 = vector.broadcast %138 : f32 to vector<8x16xf32>
      %458 = arith.mulf %457, %456 : vector<8x16xf32>
      %459 = arith.addf %443, %458 : vector<8x16xf32>
      %460 = vector.extract_strided_slice %368 {offsets = [0, 0], sizes = [8, 16], strides = [1, 1]} : vector<20x16xf32> to vector<8x16xf32>
      %461 = vector.broadcast %97 : f32 to vector<8x16xf32>
      %462 = arith.mulf %461, %460 : vector<8x16xf32>
      %463 = arith.addf %447, %462 : vector<8x16xf32>
      %464 = vector.extract_strided_slice %368 {offsets = [2, 0], sizes = [8, 16], strides = [1, 1]} : vector<20x16xf32> to vector<8x16xf32>
      %465 = vector.broadcast %104 : f32 to vector<8x16xf32>
      %466 = arith.mulf %465, %464 : vector<8x16xf32>
      %467 = arith.addf %451, %466 : vector<8x16xf32>
      %468 = vector.extract_strided_slice %368 {offsets = [4, 0], sizes = [8, 16], strides = [1, 1]} : vector<20x16xf32> to vector<8x16xf32>
      %469 = vector.broadcast %111 : f32 to vector<8x16xf32>
      %470 = arith.mulf %469, %468 : vector<8x16xf32>
      %471 = arith.addf %455, %470 : vector<8x16xf32>
      %472 = vector.extract_strided_slice %368 {offsets = [6, 0], sizes = [8, 16], strides = [1, 1]} : vector<20x16xf32> to vector<8x16xf32>
      %473 = vector.broadcast %118 : f32 to vector<8x16xf32>
      %474 = arith.mulf %473, %472 : vector<8x16xf32>
      %475 = arith.addf %459, %474 : vector<8x16xf32>
      %476 = vector.extract_strided_slice %368 {offsets = [8, 0], sizes = [8, 16], strides = [1, 1]} : vector<20x16xf32> to vector<8x16xf32>
      %477 = vector.broadcast %125 : f32 to vector<8x16xf32>
      %478 = arith.mulf %477, %476 : vector<8x16xf32>
      %479 = arith.addf %463, %478 : vector<8x16xf32>
      %480 = vector.extract_strided_slice %368 {offsets = [10, 0], sizes = [8, 16], strides = [1, 1]} : vector<20x16xf32> to vector<8x16xf32>
      %481 = vector.broadcast %132 : f32 to vector<8x16xf32>
      %482 = arith.mulf %481, %480 : vector<8x16xf32>
      %483 = arith.addf %467, %482 : vector<8x16xf32>
      %484 = vector.extract_strided_slice %368 {offsets = [12, 0], sizes = [8, 16], strides = [1, 1]} : vector<20x16xf32> to vector<8x16xf32>
      %485 = vector.broadcast %139 : f32 to vector<8x16xf32>
      %486 = arith.mulf %485, %484 : vector<8x16xf32>
      %487 = arith.addf %471, %486 : vector<8x16xf32>
      %488 = vector.extract_strided_slice %369 {offsets = [0, 0], sizes = [8, 16], strides = [1, 1]} : vector<20x16xf32> to vector<8x16xf32>
      %489 = vector.broadcast %98 : f32 to vector<8x16xf32>
      %490 = arith.mulf %489, %488 : vector<8x16xf32>
      %491 = arith.addf %475, %490 : vector<8x16xf32>
      %492 = vector.extract_strided_slice %369 {offsets = [2, 0], sizes = [8, 16], strides = [1, 1]} : vector<20x16xf32> to vector<8x16xf32>
      %493 = vector.broadcast %105 : f32 to vector<8x16xf32>
      %494 = arith.mulf %493, %492 : vector<8x16xf32>
      %495 = arith.addf %479, %494 : vector<8x16xf32>
      %496 = vector.extract_strided_slice %369 {offsets = [4, 0], sizes = [8, 16], strides = [1, 1]} : vector<20x16xf32> to vector<8x16xf32>
      %497 = vector.broadcast %112 : f32 to vector<8x16xf32>
      %498 = arith.mulf %497, %496 : vector<8x16xf32>
      %499 = arith.addf %483, %498 : vector<8x16xf32>
      %500 = vector.extract_strided_slice %369 {offsets = [6, 0], sizes = [8, 16], strides = [1, 1]} : vector<20x16xf32> to vector<8x16xf32>
      %501 = vector.broadcast %119 : f32 to vector<8x16xf32>
      %502 = arith.mulf %501, %500 : vector<8x16xf32>
      %503 = arith.addf %487, %502 : vector<8x16xf32>
      %504 = vector.extract_strided_slice %369 {offsets = [8, 0], sizes = [8, 16], strides = [1, 1]} : vector<20x16xf32> to vector<8x16xf32>
      %505 = vector.broadcast %126 : f32 to vector<8x16xf32>
      %506 = arith.mulf %505, %504 : vector<8x16xf32>
      %507 = arith.addf %491, %506 : vector<8x16xf32>
      %508 = vector.extract_strided_slice %369 {offsets = [10, 0], sizes = [8, 16], strides = [1, 1]} : vector<20x16xf32> to vector<8x16xf32>
      %509 = vector.broadcast %133 : f32 to vector<8x16xf32>
      %510 = arith.mulf %509, %508 : vector<8x16xf32>
      %511 = arith.addf %495, %510 : vector<8x16xf32>
      %512 = vector.extract_strided_slice %369 {offsets = [12, 0], sizes = [8, 16], strides = [1, 1]} : vector<20x16xf32> to vector<8x16xf32>
      %513 = vector.broadcast %140 : f32 to vector<8x16xf32>
      %514 = arith.mulf %513, %512 : vector<8x16xf32>
      %515 = arith.addf %499, %514 : vector<8x16xf32>
      %516 = vector.extract_strided_slice %370 {offsets = [0, 0], sizes = [8, 16], strides = [1, 1]} : vector<20x16xf32> to vector<8x16xf32>
      %517 = vector.broadcast %99 : f32 to vector<8x16xf32>
      %518 = arith.mulf %517, %516 : vector<8x16xf32>
      %519 = arith.addf %503, %518 : vector<8x16xf32>
      %520 = vector.extract_strided_slice %370 {offsets = [2, 0], sizes = [8, 16], strides = [1, 1]} : vector<20x16xf32> to vector<8x16xf32>
      %521 = vector.broadcast %106 : f32 to vector<8x16xf32>
      %522 = arith.mulf %521, %520 : vector<8x16xf32>
      %523 = arith.addf %507, %522 : vector<8x16xf32>
      %524 = vector.extract_strided_slice %370 {offsets = [4, 0], sizes = [8, 16], strides = [1, 1]} : vector<20x16xf32> to vector<8x16xf32>
      %525 = vector.broadcast %113 : f32 to vector<8x16xf32>
      %526 = arith.mulf %525, %524 : vector<8x16xf32>
      %527 = arith.addf %511, %526 : vector<8x16xf32>
      %528 = vector.extract_strided_slice %370 {offsets = [6, 0], sizes = [8, 16], strides = [1, 1]} : vector<20x16xf32> to vector<8x16xf32>
      %529 = vector.broadcast %120 : f32 to vector<8x16xf32>
      %530 = arith.mulf %529, %528 : vector<8x16xf32>
      %531 = arith.addf %515, %530 : vector<8x16xf32>
      %532 = vector.extract_strided_slice %370 {offsets = [8, 0], sizes = [8, 16], strides = [1, 1]} : vector<20x16xf32> to vector<8x16xf32>
      %533 = vector.broadcast %127 : f32 to vector<8x16xf32>
      %534 = arith.mulf %533, %532 : vector<8x16xf32>
      %535 = arith.addf %519, %534 : vector<8x16xf32>
      %536 = vector.extract_strided_slice %370 {offsets = [10, 0], sizes = [8, 16], strides = [1, 1]} : vector<20x16xf32> to vector<8x16xf32>
      %537 = vector.broadcast %134 : f32 to vector<8x16xf32>
      %538 = arith.mulf %537, %536 : vector<8x16xf32>
      %539 = arith.addf %523, %538 : vector<8x16xf32>
      %540 = vector.extract_strided_slice %370 {offsets = [12, 0], sizes = [8, 16], strides = [1, 1]} : vector<20x16xf32> to vector<8x16xf32>
      %541 = vector.broadcast %141 : f32 to vector<8x16xf32>
      %542 = arith.mulf %541, %540 : vector<8x16xf32>
      %543 = arith.addf %527, %542 : vector<8x16xf32>
      %544 = vector.extract_strided_slice %371 {offsets = [0, 0], sizes = [8, 16], strides = [1, 1]} : vector<20x16xf32> to vector<8x16xf32>
      %545 = vector.broadcast %100 : f32 to vector<8x16xf32>
      %546 = arith.mulf %545, %544 : vector<8x16xf32>
      %547 = arith.addf %531, %546 : vector<8x16xf32>
      %548 = vector.extract_strided_slice %371 {offsets = [2, 0], sizes = [8, 16], strides = [1, 1]} : vector<20x16xf32> to vector<8x16xf32>
      %549 = vector.broadcast %107 : f32 to vector<8x16xf32>
      %550 = arith.mulf %549, %548 : vector<8x16xf32>
      %551 = arith.addf %535, %550 : vector<8x16xf32>
      %552 = vector.extract_strided_slice %371 {offsets = [4, 0], sizes = [8, 16], strides = [1, 1]} : vector<20x16xf32> to vector<8x16xf32>
      %553 = vector.broadcast %114 : f32 to vector<8x16xf32>
      %554 = arith.mulf %553, %552 : vector<8x16xf32>
      %555 = arith.addf %539, %554 : vector<8x16xf32>
      %556 = vector.extract_strided_slice %371 {offsets = [6, 0], sizes = [8, 16], strides = [1, 1]} : vector<20x16xf32> to vector<8x16xf32>
      %557 = vector.broadcast %121 : f32 to vector<8x16xf32>
      %558 = arith.mulf %557, %556 : vector<8x16xf32>
      %559 = arith.addf %543, %558 : vector<8x16xf32>
      %560 = vector.extract_strided_slice %371 {offsets = [8, 0], sizes = [8, 16], strides = [1, 1]} : vector<20x16xf32> to vector<8x16xf32>
      %561 = vector.broadcast %128 : f32 to vector<8x16xf32>
      %562 = arith.mulf %561, %560 : vector<8x16xf32>
      %563 = arith.addf %547, %562 : vector<8x16xf32>
      %564 = vector.extract_strided_slice %371 {offsets = [10, 0], sizes = [8, 16], strides = [1, 1]} : vector<20x16xf32> to vector<8x16xf32>
      %565 = vector.broadcast %135 : f32 to vector<8x16xf32>
      %566 = arith.mulf %565, %564 : vector<8x16xf32>
      %567 = arith.addf %551, %566 : vector<8x16xf32>
      %568 = vector.extract_strided_slice %371 {offsets = [12, 0], sizes = [8, 16], strides = [1, 1]} : vector<20x16xf32> to vector<8x16xf32>
      %569 = vector.broadcast %142 : f32 to vector<8x16xf32>
      %570 = arith.mulf %569, %568 : vector<8x16xf32>
      %571 = arith.addf %555, %570 : vector<8x16xf32>
      %572 = arith.addf %571, %559 : vector<8x16xf32>
      %573 = arith.addf %563, %567 : vector<8x16xf32>
      %574 = arith.addf %572, %573 : vector<8x16xf32>
      %575 = arith.negf %574 : vector<8x16xf32>
      %576 = math.exp %575 : vector<8x16xf32>
      %cst_76 = arith.constant 1.000000e+00 : f32
      %577 = vector.broadcast %cst_76 : f32 to vector<8x16xf32>
      %578 = arith.addf %577, %576 : vector<8x16xf32>
      %579 = arith.divf %577, %578 : vector<8x16xf32>
      %580 = arith.mulf %579, %574 : vector<8x16xf32>
      %c0_77 = arith.constant 0 : index
      %c0_78 = arith.constant 0 : index
      %c8_79 = arith.constant 8 : index
      %c0_80 = arith.constant 0 : index
      %581 = vector.load %arg5[%c0_77, %c0_78, %c8_79, %c0_80] : memref<1x1x16x16xf32, #tpu.memory_space<vmem>>, vector<1x1x8x16xf32>
      %582 = vector.shape_cast %581 : vector<1x1x8x16xf32> to vector<8x16xf32>
      %583 = vector.shape_cast %580 : vector<8x16xf32> to vector<1x1x8x16xf32>
      tpu.vector_store %arg5[%c0_77, %c0_78, %c8_79, %c0_80], %583 {strides = array<i32>} : memref<1x1x16x16xf32, #tpu.memory_space<vmem>>, vector<1x1x8x16xf32>,
    } else {
    }
    return
  }
  func.func @transform_0(%arg0: i32, %arg1: i32, %arg2: memref<49xf32, #tpu.memory_space<smem>>, %arg3: memref<1xf32, #tpu.memory_space<smem>>) -> (i32, i32, i32) {
    %c0_i32 = arith.constant 0 : i32
    %c0_i32_0 = arith.constant 0 : i32
    return %arg0, %arg1, %c0_i32 : i32, i32, i32
  }
  func.func @transform_1(%arg0: i32, %arg1: i32, %arg2: memref<49xf32, #tpu.memory_space<smem>>, %arg3: memref<1xf32, #tpu.memory_space<smem>>) -> (i32, i32, i32, i32) {
    %c0_i32 = arith.constant 0 : i32
    %c0_i32_0 = arith.constant 0 : i32
    %c0_i32_1 = arith.constant 0 : i32
    %c0_i32_2 = arith.constant 0 : i32
    return %arg0, %c0_i32, %c0_i32_0, %c0_i32_1 : i32, i32, i32, i32
  }
}

</mosaic_0001>

<bundles_post_ra>
// kernel: tpu_custom_call.1
= control target key start
LH: loop header
LB: loop body
LE: loop exit
PB: predicated region body
PF: predicated region fallthrough
CT: control target
= control target key end

     0   :  { %s3300_s0 = inlined_call_operand.vmem [shape: f32[49], index: 0, kind: input, shape index: {}]   ;;  %s3301_s1 = inlined_call_operand.<no memory space> [shape: f32[1], index: 1, kind: input, shape index: {}]   ;;  %s3302_s2 = inlined_call_operand.hbm [shape: bf16[2,4,256], index: 2, kind: input, shape index: {}]   ;;  %s3303_s3 = inlined_call_operand.hbm [shape: f32[2,1,16,16], index: 3, kind: output, shape index: {}]  }
   0x1   :  { %3364 = sst [smem:[#allocation48_spill]] %s3302_s2  ;;  %s8_s14 = sshll.u32 %s3300_s0, 4  ;;  %s9_s14 = int_to_ptr.vmem [resolvable:$true] %s8_s14 }
   0x2   :  { %12 = sst [smem:[#allocation6]] %s3301_s1  ;;  %s1879_s17 = scalar_lea.vmem %s9_s14, 16 }
   0x3   :  { %p1880_p0 = scmp.ne.s32.totalorder %s9_s14, %s1879_s17  ;;  %p1884_p1 = scmp.lt.s32.totalorder %s9_s14, %s9_s14 }
   0x4   :  { %p1885_p2 = scmp.lt.s32.totalorder %s1879_s17, %s1879_s17 }
   0x6   :  { %p1886_p3 = por %p1885_p2, %p1884_p1 }
   0x8   :  { %p1887_p4 = pnand %p1886_p3, %p1880_p0 }
   0xa   :  { %1890 = shalt.err (!%p1887_p4)  }
   0xb   :  { %s2007_s18 = smov [#allocation5]  }
   0xc   :  { %11 = dma.vmem_to_smem %s9_s14, 16, %s2007_s18, [#allocation4] }
   0xd   :  { %1973 = dma.done.wait [#allocation4], 16 }
   0xe   :  { %1974 = vsyncadd [#allocation4], 4294967280 }
   0xf   :  { %14 = sfence }
  0x10   :  { %15 = vsyncpa [#allocation8], 0 }
  0x11   :  { %17 = vsyncpa [#allocation8 + $0x1], 0 }
  0x12   :  { %18 = vsyncpa [#allocation9], 0 }
  0x13   :  { %20 = vsyncpa [#allocation9 + $0x1], 0  ;;  %s2053_s0 = smov 0   ;;  %s2055_s1 = smov 0  }
  0x14   :  { %s2057_s19 = smov 0   ;;  %s2059_s20 = smov 0  }
  0x15   :  { %s2061_s21 = smov 0   ;;  %s2063_s22 = smov 0  }
  0x16 LB: > { %3365 = sst [smem:[#allocation14_spill]] %s2001_s21  ;;  %s1703_s23 = sadd.s32 4294967295, %s2005_s22   ;;  %s2005_s22 = sphi %s2063_s22, %s26_s22   ;;  %s2001_s21 = sphi %s2061_s21, %s3507_s21   ;;  %s1997_s20 = sphi %s2059_s20, %s3506_s20   ;;  %s1993_s19 = sphi %s2057_s19, %s3510_s19   ;;  %s1989_s1 = sphi %s2055_s1, %s3509_s1   ;;  %s1985_s0 = sphi %s2053_s0, %s3508_s0  }
  0x17   : > { %s1704_s24 = sadd.s32 4294967294, %s2005_s22   ;;  %s38_s25 = sadd.s32 1, %s2001_s21 }
  0x18   : > { %s47_s26 = sadd.s32 1, %s1993_s19  ;;  %p40_p5 = scmp.ge.s32.totalorder %s38_s25, 2 }
  0x19   : > { %p54_p6 = scmp.ne.s32.totalorder %s1993_s19, %s1989_s1  ;;  %p55_p7 = scmp.eq.s32.totalorder %s2005_s22, 0 }
  0x1a   : > { %p60_p8 = scmp.ne.s32.totalorder %s1989_s1, %s1985_s0  ;;  %s3512_s25 = smov (%p40_p5, %s38_s25), 0 }
  0x1b   : > { %3366 = sst [smem:[#allocation15_spill]] %s3512_s25  ;;  %p2094_p9 = por %p55_p7, %p54_p6 }
  0x1c   : > { %p61_p10 = scmp.eq.s32.totalorder %s1703_s23, 0  ;;  %s42_s28 = ssub.s32 %s2001_s21, %s3512_s25 }
  0x1d   : > { %p84_p11 = scmp.eq.s32.totalorder %s1703_s23, 1  ;;  %p45_p12 = scmp.eq.s32.totalorder %s42_s28, 0 }
  0x1e   : > { %p2100_p13 = por %p61_p10, %p60_p8  ;;  %p90_p1 = scmp.eq.s32.totalorder %s1704_s24, 1 }
  0x1f   : > { %p2104_p0 = por %p84_p11, %p54_p6  ;;  %p1798_p4 = scmp.lt.s32.totalorder %s2005_s22, 2 }
  0x20   : > { %s2109_s4 = scalar_select %p45_p12, %s1993_s19, %s47_s26  }
  0x21   : > { %s3369_s30 = scalar_select %p2104_p0, 1, 0 }
  0x22   : > { %3370 = sst [smem:[#allocation16_spill]] %s2109_s4  ;;  %p2111_p2 = por %p90_p1, %p60_p8 }
  0x23   : > { %s110_s6 = sand.u32 1, %s1993_s19   ;;  %s1784_s8 = sshll.u32 %s2001_s21, 6 }
  0x24   : > { %s3371_s5 = scalar_select %p2111_p2, 1, 0 }
  0x25   : > { %s1707_s7 = sshll.u32 %s110_s6, 2  ;;  %s3372_s2 = sld [smem:[#allocation48_spill]] }
  0x26   : > { %s114_s12 = scalar_lea.vmem [#allocation7], %s1707_s7  ;;  %p2128_p5 = pnand %p1798_p4, %p2094_p9 }
  0x27   : > { %s124_s13 = sshll.u32 %s114_s12, 4  ;;  %s111_s15 = scalar_lea.sflag [#allocation8], %s110_s6  ;;  %s2124_s13 = int_to_ptr.vmem [resolvable:$true] %s124_s13 }
  0x28   : > { %p1893_p10 = pneg %p2128_p5 }
  0x2b   : > { %s2122_s11 = scalar_lea.hbm %s3372_s2, %s1784_s8  ;;  %s1896_s23 = scalar_lea.hbm %s3372_s2, 128 }
  0x2c   : > { %s1891_s16 = scalar_lea.hbm %s2122_s11, 64  ;;  %p1897_p9 = scmp.lt.u32.totalorder %s2122_s11, %s3372_s2 }
  0x2d   : > { %p1892_p8 = scmp.ne.s32.totalorder %s2122_s11, %s1891_s16  ;;  %p1898_p1 = scmp.lt.u32.totalorder %s1896_s23, %s1891_s16 }
  0x2e   : > { %p1900_p3 = scmp.lt.u32.totalorder %s1891_s16, %s2122_s11 }
  0x2f   : > { %p1894_p11 = pnand %p1893_p10, %p1892_p8  ;;  %p1899_p4 = por %p1898_p1, %p1897_p9 }
  0x31   : > { %p1895_p12 = pneg %p1894_p11  ;;  %p1901_p6 = por %p1900_p3, %p1899_p4 }
  0x33   : > { %p1902_p7 = pnand %p1901_p6, %p1895_p12 }
  0x35   : > { %1905 = shalt.err (!%p1902_p7)
}
  0x36   : > { %s1906_s27 = scalar_lea.vmem %s2124_s13, 64  ;;  %s2008_s28 = smov [#allocation7]  }
  0x37   : > { %p1907_p8 = scmp.ne.s32.totalorder %s2124_s13, %s1906_s27  ;;  %s1911_s6 = sshll.u32 %s2008_s28, 4  ;;  %s1912_s6 = int_to_ptr.vmem [resolvable:$false] %s1911_s6 }
  0x38   : > { %s1913_s7 = scalar_lea.vmem %s1912_s6, 128  ;;  %p1914_p0 = scmp.lt.s32.totalorder %s2124_s13, %s1912_s6 }
  0x39   : > { %p1909_p11 = pnand %p1907_p8, %p1893_p10  ;;  %p1915_p9 = scmp.lt.s32.totalorder %s1913_s7, %s1906_s27 }
  0x3b   : > { %p1910_p2 = pneg %p1909_p11  ;;  %p1916_p1 = por %p1915_p9, %p1914_p0 }
  0x3d   : > { %p1917_p3 = pnand %p1916_p1, %p1910_p2 }
  0x3f   : > { %1920 = shalt.err (!%p1917_p3)
}
  0x40   : > { %1793 = dma.hbm_to_vmem [thread:$0]  (!%p2128_p5), %s2122_s11, 64, %s2124_s13, %s111_s15  }
  0x41   : > { %p3374_p6 = scmp.lt.s32.totalorder %s2005_s22, 3  ;;  %p3375_p7 = scmp.ge.s32.totalorder %s2005_s22, 1 }
  0x43   : > { %p130_p10 = pnand %p3375_p7, %p3374_p6 }
  0x45   : > { %133 = sbr.rel (%p130_p10) target bundleno = 661 (0x295), region = 24 }
  0x4c   : > { %s2164_s8 = sand.u32 1, %s1989_s1  }
  0x4d   : > { %s1711_s9 = sshll.u32 %s2164_s8, 2  ;;  %s136_s10 = scalar_lea.sflag [#allocation8], %s2164_s8 }
  0x4e   : > { %s139_s12 = scalar_lea.vmem [#allocation7], %s1711_s9 }
  0x4f   : > { %1976 = dma.done.wait (%p2100_p13), %s136_s10, 64  }
  0x50   : > { %1978 = vsyncadd (%p2100_p13), %s136_s10, 4294967232  ;;  %vm205_vm0 = vcmask 228352   ;;  %vm209_vm1 = vcmask 224256   ;;  %v2009_v0 = vmov 0.0   ;;  %v158_v1 = vld [vmem:[%s139_s12] sm:$0xf]  ;;  %v188_v13 = vlaneseq }
  0x51   : > { %207 = vst.msk [vmem:[#allocation3 + $0x8] sm:$0xff] %vm205_vm0, %v2009_v0  ;;  %206 = vst.msk [vmem:[#allocation3] sm:$0xff] %vm205_vm0, %v2009_v0  ;;  %vm163_vm2 = vcmask 1043456   ;;  %v159_v2 = vunpack.c.l.bf16 %v158_v1  ;;  %v2010_v11 = vmov 1966171168   ;;  %s2011_s29 = smov 102  }
  0x52   : > { %210 = vst.msk [vmem:[#allocation3 + $0x18] sm:$0xf] %vm209_vm1, %v2009_v0  ;;  %v186_v12 = vunpack.c.l.s4 %v2010_v11  ;;  %v189_v19 = vshrl.u32 %v188_v13, 7  ;;  %vm202_vm3 = vcmp.lt.s32.totalorder %v188_v13, 256  ;;  %s2012_s11 = smov 6   ;;  %s2013_s13 = smov 86  }
  0x53   : > { %208 = vst.msk [vmem:[#allocation3 + $0x10] sm:$0xff] %vm205_vm0, %v2009_v0  ;;  %v161_v3 = vcombine.high %v159_v2, %v159_v2  ;;  %v164_v4 = vsel %vm163_vm2, %v159_v2, 0.0  ;;  %s3307_s14 = smov 118   ;;  %s2015_s15 = smov 54   ;;  %vm252_vm4 = vcmask 172080   ;;  %vm503_vm5 = vcmask 1045504  }
  0x54   : > { %v165_v5 = vrot.slane %v164_v4, 4  ;;  %v187_v18 = vunpack.c.0.s8 %v186_v12  ;;  %s2016_s16 = smov 70   ;;  %s2017_s17 = smov 22   ;;  %vm684_vm6 = vcmask 1041408   ;;  %vm1054_vm7 = vcmask 130048  }
  0x55   : > { %v171_v6 = vsel %vm163_vm2, %v161_v3, 0.0  ;;  %s2018_s18 = smov 38   ;;  %s1739_s23 = sld [smem:[#allocation5 + $0xb]] }
  0x56   : > { %v166_v7 = vadd.f32 %v165_v5, %v164_v4  ;;  %v172_v8 = vrot.slane %v171_v6, 4  ;;  %v190_v23 = vsub.s32 %v187_v18, %v189_v19  ;;  %s2178_s24 = sld [smem:[#allocation5 + $0x4]]  ;;  %s1746_s26 = sld [smem:[#allocation5 + $0x12]] }
  0x57   : > { %s1753_s27 = sld [smem:[#allocation5 + $0x19]]  ;;  %s2198_s28 = sld [smem:[#allocation5 + $0x20]] }
  0x58   : > { %v167_v9 = vrot.slane %v166_v7, 2  ;;  %v173_v10 = vadd.f32 %v172_v8, %v171_v6  ;;  %s3305_s6 = smov 120   ;;  %s1767_s7 = sld [smem:[#allocation5 + $0x27]] }
  0x59   : > { %s2222_s9 = sld [smem:[#allocation5 + $0x1]]  ;;  %s1774_s10 = sld [smem:[#allocation5 + $0x2e]] }
  0x5a   : > { %v168_v14 = vadd.f32 %v167_v9, %v166_v7  ;;  %v174_v15 = vrot.slane %v173_v10, 2  ;;  %s2226_s12 = sld [smem:[#allocation5 + $0x1e]]  ;;  %s2021_s2 = smov 124  }
  0x5b   : > { %v2184_v35 = vstv %s1739_s23  ;;  %s1771_s23 = sld [smem:[#allocation5 + $0x2b]]  ;;  %s1773_s25 = sld [smem:[#allocation5 + $0x2d]] }
  0x5c   : > { %v169_v16 = vrot.slane %v168_v14, 1  ;;  %v175_v17 = vadd.f32 %v174_v15, %v173_v10  ;;  %3376 = vst [vmem:[#allocation17_spill] sm:$0xff] %v2184_v35  ;;  %v3313_v36 = vstv %s2178_s24  ;;  %v2196_v42 = vstv %s1746_s26  ;;  %s2306_s26 = sld [smem:[#allocation5 + $0x3]]  ;;  %s1764_s21 = sld [smem:[#allocation5 + $0x24]] }
  0x5d   : > { %3377 = vst [vmem:[#allocation18_spill] sm:$0xff] %v2196_v42  ;;  %v2206_v46 = vstv %s1753_s27  ;;  %v811_v50 = vstv %s2198_s28  ;;  %s1737_s27 = sld [smem:[#allocation5 + $0x9]]  ;;  %s3309_s28 = smov 126  }
  0x5e   : > { %v170_v20 = vadd.f32 %v169_v16, %v168_v14  ;;  %v176_v21 = vrot.slane %v175_v17, 1  ;;  %v2243_v60 = vstv %s1767_s7  ;;  %s2319_s7 = sld [smem:[#allocation5 + $0x17]]  ;;  %s2346_s4 = sld [smem:[#allocation5 + $0x26]] }
  0x5f   : > { %3378 = vst [vmem:[#allocation19_spill] sm:$0xff] %v2243_v60  ;;  %v3319_v63 = vstv %s2222_s9  ;;  %v2257_v0 = vstv %s1774_s10  ;;  %s1747_s10 = sld [smem:[#allocation5 + $0x13]]  ;;  %p3502_p0 = scmp.ne.s32.totalorder %s3369_s30, 0 }
  0x60   : > { %v177_v22 = vadd.f32 %v176_v21, %v175_v17  ;;  %3380 = vst [vmem:[#allocation21_spill] sm:$0xff] %v2257_v0  ;;  %v633_v1 = vstv %s2226_s12  ;;  %s1754_s12 = sld [smem:[#allocation5 + $0x1a]] }
  0x62   : > { %v184_v24 = vcombine.low %v170_v20, %v177_v22 }
  0x64   : > { %v191_v25 = vrot.slane %v184_v24, %v190_v23 }
  0x66   : > { %v198_v26 = vrot.slane %v191_v25, %v190_v23 }
  0x68   : > { %204 = vst.msk [vmem:[#allocation2] sm:$0x3] %vm202_vm3, %v198_v26  ;;  %v2324_v26 = vstv %s1771_s23  ;;  %s3386_s23 = smov 126  }
  0x6f   : > { %v1715_v27 = vld [vmem:[#allocation2] ss:$0 sm:$0xff]  ;;  %v1722_v28 = vld [vmem:[#allocation2 + $0x1] ss:$0 sm:$0xff] }
  0x70   : > { %270 = vrot.lane.b32.xlu1 %v1715_v27, %s2011_s29  ;;  %249 = vrot.lane.b32.xlu0 %v1715_v27, %s2012_s11 }
  0x74   : > { %280 = vrot.lane.b32.xlu1 %v1715_v27, %s2013_s13  ;;  %260 = vrot.lane.b32.xlu0 %v1715_v27, %s3307_s14 }
  0x78   : > { %300 = vrot.lane.b32.xlu1 %v1715_v27, %s2015_s15  ;;  %290 = vrot.lane.b32.xlu0 %v1715_v27, %s2016_s16 }
  0x7c   : > { %320 = vrot.lane.b32.xlu1 %v1715_v27, %s2017_s17  ;;  %310 = vrot.lane.b32.xlu0 %v1715_v27, %s2018_s18 }
  0x80   : > { %340 = vrot.lane.b32.xlu1 %v1722_v28, %s3307_s14  ;;  %330 = vrot.lane.b32.xlu0 %v1722_v28, %s2012_s11  ;;  %s2230_s11 = sld [smem:[#allocation5 + $0x21]]  ;;  %s1765_s14 = sld [smem:[#allocation5 + $0x25]] }
  0x84   : > { %360 = vrot.lane.b32.xlu1 %v1722_v28, %s2013_s13  ;;  %350 = vrot.lane.b32.xlu0 %v1722_v28, %s2011_s29  ;;  %s2228_s29 = sld [smem:[#allocation5 + $0x1f]]  ;;  %s2236_s13 = sld [smem:[#allocation5 + $0x1d]] }
  0x86   : > { %v3321_v6 = vstv %s2230_s11 }
  0x88   : > { %380 = vrot.lane.b32.xlu1 %v1722_v28, %s2015_s15  ;;  %370 = vrot.lane.b32.xlu0 %v1722_v28, %s2016_s16  ;;  %s2238_s15 = sld [smem:[#allocation5 + $0x22]]  ;;  %s1743_s16 = sld [smem:[#allocation5 + $0xf]] }
  0x8a   : > { %v724_v5 = vstv %s2228_s29  ;;  %v543_v11 = vstv %s2236_s13  ;;  %s2478_s29 = sld [smem:[#allocation5 + $0x15]]  ;;  %s2525_s13 = sld [smem:[#allocation5 + $0xc]] }
  0x8c   : > { %400 = vrot.lane.b32.xlu1 %v1722_v28, %s2017_s17  ;;  %390 = vrot.lane.b32.xlu0 %v1722_v28, %s2018_s18  ;;  %s2252_s17 = sld [smem:[#allocation5 + $0x2]]  ;;  %s1750_s18 = sld [smem:[#allocation5 + $0x16]] }
  0x8e   : > { %v3320_v13 = vstv %s2238_s15  ;;  %v2296_v15 = vstv %s1743_s16  ;;  %s1738_s16 = sld [smem:[#allocation5 + $0xa]] }
  0x92   : > { %v3315_v20 = vstv %s2252_s17  ;;  %v2310_v21 = vstv %s1750_s18  ;;  %s1745_s18 = sld [smem:[#allocation5 + $0x11]] }
  0xe2   : > { %v271_v29 = vpop.permute.xlu1 %270  ;;  %v250_v30 = vpop.permute.xlu0 %249 }
  0xe3   : > { %273 = vst.msk [vmem:[#allocation3 + $0x8] sm:$0x1] %vm252_vm4, %v271_v29  ;;  %253 = vst.msk [vmem:[#allocation3 + $0x6] sm:$0x1] %vm252_vm4, %v250_v30 }
  0xe6   : > { %v281_v31 = vpop.permute.xlu1 %280  ;;  %v261_v32 = vpop.permute.xlu0 %260 }
  0xe7   : > { %283 = vst.msk [vmem:[#allocation3 + $0x9] sm:$0x1] %vm252_vm4, %v281_v31  ;;  %263 = vst.msk [vmem:[#allocation3 + $0x7] sm:$0x1] %vm252_vm4, %v261_v32  ;;  %v3314_v31 = vstv %s2306_s26  ;;  %v589_v32 = vstv %s1737_s27  ;;  %s2344_s27 = sld [smem:[#allocation5 + $0x2f]] }
  0xea   : > { %v301_v33 = vpop.permute.xlu1 %300  ;;  %v291_v34 = vpop.permute.xlu0 %290 }
  0xeb   : > { %303 = vst.msk [vmem:[#allocation3 + $0xb] sm:$0x1] %vm252_vm4, %v301_v33  ;;  %293 = vst.msk [vmem:[#allocation3 + $0xa] sm:$0x1] %vm252_vm4, %v291_v34 }
  0xee   : > { %v2187_v37 = vld [vmem:[#allocation3] sm:$0xff]  ;;  %v321_v38 = vpop.permute.xlu1 %320  ;;  %v311_v39 = vpop.permute.xlu0 %310 }
  0xef   : > { %323 = vst.msk [vmem:[#allocation3 + $0xd] sm:$0x1] %vm252_vm4, %v321_v38  ;;  %313 = vst.msk [vmem:[#allocation3 + $0xc] sm:$0x1] %vm252_vm4, %v311_v39  ;;  %v773_v40 = vmul.f32 %v2184_v35, %v2187_v37  ;;  %v766_v41 = vmul.f32 %v3313_v36, %v2187_v37  ;;  %v786_v45 = vmul.f32 %v2196_v42, %v2187_v37 }
  0xf0   : > { %v799_v49 = vmul.f32 %v2206_v46, %v2187_v37  ;;  %v490_v4 = vmul.f32 %v3319_v63, %v2187_v37  ;;  %v581_v25 = vmul.f32 %v3315_v20, %v2187_v37  ;;  %v671_v38 = vmul.f32 %v3314_v31, %v2187_v37 }
  0xf1   : > { %777 = vrot.lane.b32.xlu0 %v773_v40, %s3305_s6  ;;  %768 = vrot.lane.b32.xlu1 %v766_v41, %s3305_s6  ;;  %v2342_v39 = vmul.f32 %v589_v32, %v2187_v37  ;;  %v2353_v40 = vstv %s2319_s7  ;;  %v2355_v41 = vstv %s1747_s10  ;;  %s2022_s7 = smov 122   ;;  %s2023_s10 = smov 116  }
  0xf2   : > { %v341_v43 = vpop.permute.xlu1 %340  ;;  %v331_v44 = vpop.permute.xlu0 %330  ;;  %v492_v17 = vrot.slane %v490_v4, 2  ;;  %v583_v28 = vrot.slane %v581_v25, 4 }
  0xf3   : > { %343 = vst.msk [vmem:[#allocation3 + $0xf] sm:$0x1] %vm252_vm4, %v341_v43  ;;  %333 = vst.msk [vmem:[#allocation3 + $0xe] sm:$0x1] %vm252_vm4, %v331_v44  ;;  %v2357_v43 = vstv %s1754_s12  ;;  %v2359_v44 = vstv %s1738_s16  ;;  %s2603_s12 = sld [smem:[#allocation5]]  ;;  %s2610_s16 = sld [smem:[#allocation5 + $0x1c]] }
  0xf5   : > { %790 = vrot.lane.b32.xlu0 %v786_v45, %s3305_s6  ;;  %v673_v45 = vrot.slane %v671_v38, 6 }
  0xf6   : > { %v361_v47 = vpop.permute.xlu1 %360  ;;  %v351_v48 = vpop.permute.xlu0 %350 }
  0xf7   : > { %363 = vst.msk [vmem:[#allocation3 + $0x11] sm:$0x1] %vm252_vm4, %v361_v47  ;;  %353 = vst.msk [vmem:[#allocation3 + $0x10] sm:$0x1] %vm252_vm4, %v351_v48  ;;  %v3317_v47 = vrot.slane %v2342_v39, 4 }
  0xf9   : > { %803 = vrot.lane.b32.xlu0 %v799_v49, %s3305_s6 }
  0xfa   : > { %v2215_v51 = vld [vmem:[#allocation3 + $0x8] sm:$0xff]  ;;  %v381_v52 = vpop.permute.xlu1 %380  ;;  %v371_v53 = vpop.permute.xlu0 %370 }
  0xfb   : > { %383 = vst.msk [vmem:[#allocation3 + $0x13] sm:$0x1] %vm252_vm4, %v381_v52  ;;  %373 = vst.msk [vmem:[#allocation3 + $0x12] sm:$0x1] %vm252_vm4, %v371_v53  ;;  %v812_v54 = vmul.f32 %v811_v50, %v2215_v51  ;;  %v774_v55 = vmul.f32 %v2184_v35, %v2215_v51  ;;  %v787_v58 = vmul.f32 %v2196_v42, %v2215_v51  ;;  %v2369_v52 = vstv %s1765_s14  ;;  %s2459_s14 = sld [smem:[#allocation5 + $0x29]] }
  0xfc   : > { %v2247_v61 = vmul.f32 %v2206_v46, %v2215_v51  ;;  %v819_v3 = vmul.f32 %v2243_v60, %v2215_v51  ;;  %v832_v16 = vmul.f32 %v2257_v0, %v2215_v51  ;;  %v513_v18 = vmul.f32 %v2296_v15, %v2215_v51 }
  0xfd   : > { %814 = vrot.lane.b32.xlu0 %v812_v54, %s3305_s6  ;;  %779 = vrot.lane.b32.xlu1 %v774_v55, %s3305_s6  ;;  %v544_v19 = vmul.f32 %v543_v11, %v2215_v51  ;;  %v529_v24 = vmul.f32 %v2310_v21, %v2215_v51  ;;  %v634_v29 = vmul.f32 %v633_v1, %v2215_v51  ;;  %v696_v53 = vstv %s1745_s18  ;;  %s2622_s18 = sld [smem:[#allocation6]] }
  0xfe   : > { %v401_v56 = vpop.permute.xlu1 %400  ;;  %v391_v57 = vpop.permute.xlu0 %390  ;;  %3379 = vst [vmem:[#allocation20_spill] sm:$0xff] %v2247_v61  ;;  %v2312_v22 = vrot.slane %v513_v18, 2  ;;  %v725_v48 = vmul.f32 %v724_v5, %v2215_v51  ;;  %v619_v49 = vmul.f32 %v2353_v40, %v2215_v51  ;;  %v2411_v18 = vstv %s2346_s4  ;;  %s2452_s4 = sld [smem:[#allocation5 + $0x1b]] }
  0xff   : > { %403 = vst.msk [vmem:[#allocation3 + $0x15] sm:$0x1] %vm252_vm4, %v401_v56  ;;  %393 = vst.msk [vmem:[#allocation3 + $0x14] sm:$0x1] %vm252_vm4, %v391_v57  ;;  %v546_v23 = vrot.slane %v544_v19, 2  ;;  %v2326_v27 = vrot.slane %v529_v24, 2  ;;  %v2379_v56 = vstv %s1773_s25  ;;  %v2381_v57 = vstv %s1764_s21 }
 0x100   : > { %v636_v33 = vrot.slane %v634_v29, 4  ;;  %v727_v4 = vrot.slane %v725_v48, 6  ;;  %v2420_v24 = vmul.f32 %v696_v53, %v2187_v37  ;;  %s2437_s21 = sld [smem:[#allocation5 + $0x18]]  ;;  %s3387_s25 = smov 118  }
 0x101   : > { %792 = vrot.lane.b32.xlu1 %v787_v58, %s3305_s6  ;;  %v867_v58 = vmul.f32 %v2355_v41, %v2215_v51 }
 0x102   : > { %v2241_v59 = vld [vmem:[#allocation3 + $0x10] sm:$0xf] }
 0x103   : > { %v820_v62 = vmul.f32 %v2243_v60, %v2241_v59  ;;  %v833_v8 = vmul.f32 %v2257_v0, %v2241_v59  ;;  %v2331_v30 = vmul.f32 %v2324_v26, %v2241_v59 }
 0x105   : > { %805 = vrot.lane.b32.xlu1 %v2247_v61, %s3305_s6  ;;  %825 = vrot.lane.b32.xlu0 %v820_v62, %s3305_s6  ;;  %v3318_v34 = vrot.slane %v2331_v30, 2 }
 0x106   : > { %v2260_v2 = vld [vmem:[#allocation3 + $0x10] sm:$0xff] }
 0x107   : > { %v2270_v7 = vmul.f32 %v2260_v2, %v811_v50  ;;  %v2275_v9 = vmul.f32 %v2260_v2, %v633_v1  ;;  %v2280_v10 = vmul.f32 %v2260_v2, %v724_v5  ;;  %v2286_v12 = vmul.f32 %v2260_v2, %v3321_v6  ;;  %v2367_v50 = vld [vmem:[#allocation3 + $0x18] sm:$0xf] }
 0x108   : > { %v2294_v14 = vmul.f32 %v2260_v2, %v3320_v13  ;;  %v2388_v62 = vmul.f32 %v2260_v2, %v543_v11  ;;  %v1141_v1 = vmul.f32 %v2367_v50, %v2381_v57  ;;  %v2396_v5 = vrot.slane %v619_v49, 4 }
 0x109   : > { %3381 = vst [vmem:[#allocation22_spill] sm:$0xff] %v2270_v7  ;;  %3382 = vst [vmem:[#allocation23_spill] sm:$0xff] %v2275_v9  ;;  %823 = vrot.lane.b32.xlu1 %v819_v3, %s3305_s6  ;;  %838 = vrot.lane.b32.xlu0 %v833_v8, %s3305_s6  ;;  %v2394_v3 = vmul.f32 %v2367_v50, %v2379_v56  ;;  %v2400_v8 = vmul.f32 %v2369_v52, %v2215_v51  ;;  %v2554_v7 = vstv %s2459_s14  ;;  %s1735_s14 = sld [smem:[#allocation5 + $0x7]] }
 0x10a   : > { %3383 = vst [vmem:[#allocation24_spill] sm:$0xff] %v2280_v10  ;;  %3384 = vst [vmem:[#allocation25_spill] sm:$0xff] %v2286_v12  ;;  %v2405_v11 = vmul.f32 %v2359_v44, %v2187_v37  ;;  %v1175_v19 = vmul.f32 %v2260_v2, %v589_v32  ;;  %v1145_v29 = vrot.slane %v1141_v1, 2  ;;  %v1307_v48 = vmul.f32 %v2367_v50, %v2411_v18 }
 0x10b   : > { %3385 = vst [vmem:[#allocation26_spill] sm:$0xff] %v2294_v14  ;;  %v3316_v38 = vrot.slane %v2400_v8, 4  ;;  %v1272_v1 = vmul.f32 %v696_v53, %v2215_v51  ;;  %v1273_v36 = vmul.f32 %v2260_v2, %v696_v53  ;;  %v1258_v63 = vmul.f32 %v2260_v2, %v2359_v44 }
 0x10c   : > { %v3322_v49 = vrot.slane %v2405_v11, 6  ;;  %v2502_v6 = vmul.f32 %v2411_v18, %v2215_v51  ;;  %v2520_v13 = vmul.f32 %v2260_v2, %v2206_v46  ;;  %v2523_v14 = vstv %s2437_s21  ;;  %s1776_s21 = sld [smem:[#allocation5 + $0x30]] }
 0x10d   : > { %836 = vrot.lane.b32.xlu1 %v832_v16, %s3305_s6  ;;  %493 = vrot.lane.b32.xlu0 %v492_v17, %s3309_s28  ;;  %s1741_s6 = sld [smem:[#allocation5 + $0xd]]  ;;  %v1174_v16 = vmul.f32 %v589_v32, %v2215_v51  ;;  %v2408_v17 = vstv %s2344_s27  ;;  %v2425_v32 = vrot.slane %v867_v58, 2  ;;  %v2463_v31 = vrot.slane %v1272_v1, 6  ;;  %s1748_s27 = sld [smem:[#allocation5 + $0x14]] }
 0x10e   : > { %3391 = vst [vmem:[#allocation30_spill] sm:$0xff] %v2520_v13  ;;  %v3395_v46 = vrot.slane %v2420_v24, 6  ;;  %v1288_v0 = vmul.f32 %v2260_v2, %v2523_v14  ;;  %v2568_v12 = vmul.f32 %v2379_v56, %v2215_v51  ;;  %v3400_v13 = vrot.slane %v2502_v6, 6 }
 0x10f   : > { %v2422_v25 = vrot.slane %v1174_v16, 4  ;;  %v1262_v16 = vrot.slane %v1258_v63, 6 }
 0x111   : > { %521 = vrot.lane.b32.xlu1 %v2312_v22, %s3309_s28  ;;  %547 = vrot.lane.b32.xlu0 %v546_v23, %s3309_s28  ;;  %s1744_s28 = sld [smem:[#allocation5 + $0x10]]  ;;  %v883_v23 = vmul.f32 %v2357_v43, %v2215_v51 }
 0x113   : > { %v2371_v54 = vstv %s1741_s6  ;;  %s2461_s6 = sld [smem:[#allocation5 + $0x5]] }
 0x115   : > { %537 = vrot.lane.b32.xlu1 %v2326_v27, %s3386_s23  ;;  %584 = vrot.lane.b32.xlu0 %v583_v28, %s2021_s2  ;;  %v1179_v28 = vrot.slane %v1175_v19, 4 }
 0x117   : > { %v2373_v55 = vstv %s1744_s28  ;;  %v2441_v58 = vsel %vm163_vm2, %v2422_v25, %v1179_v28  ;;  %v2457_v28 = vmul.f32 %v2408_v17, %v2241_v59  ;;  %s2570_s28 = sld [smem:[#allocation5 + $0x6]] }
 0x118   : > { %v2474_v53 = vmul.f32 %v2373_v55, %v2215_v51 }
 0x119   : > { %637 = vrot.lane.b32.xlu0 %v636_v33, %s2021_s2  ;;  %574 = vrot.lane.b32.xlu1 %v3318_v34, %s3386_s23  ;;  %v1326_v33 = vrot.slane %v2394_v3, 6  ;;  %v2449_v3 = vrot.slane %v883_v23, 2  ;;  %v2467_v23 = vmul.f32 %v2260_v2, %v2353_v40  ;;  %v3394_v63 = vrot.slane %v2457_v28, 2 }
 0x11a   : > { %v3401_v10 = vstv %s2461_s6 }
 0x11b   : > { %3388 = vst [vmem:[#allocation27_spill] sm:$0xff] %v2467_v23  ;;  %v3323_v1 = vrot.slane %v2467_v23, 4  ;;  %v845_v61 = vmul.f32 %v3401_v10, %v2187_v37  ;;  %v3341_v10 = vrot.slane %v2568_v12, 6 }
 0x11d   : > { %674 = vrot.lane.b32.xlu0 %v673_v45, %s2022_s7  ;;  %597 = vrot.lane.b32.xlu1 %v3317_v47, %s2021_s2  ;;  %v1140_v45 = vmul.f32 %v2260_v2, %v2381_v57  ;;  %v2483_v47 = vmul.f32 %v2260_v2, %v2379_v56 }
 0x11f   : > { %v1144_v19 = vrot.slane %v1140_v45, 2  ;;  %v1277_v45 = vrot.slane %v1273_v36, 6  ;;  %3389 = vst [vmem:[#allocation28_spill] sm:$0xff] %v2483_v47 }
 0x121   : > { %728 = vrot.lane.b32.xlu0 %v727_v4, %s2022_s7  ;;  %627 = vrot.lane.b32.xlu1 %v2396_v5, %s2021_s2  ;;  %v2435_v4 = vmul.f32 %v2371_v54, %v2187_v37  ;;  %v2470_v20 = vsel %vm503_vm5, %v1144_v19, %v1145_v29  ;;  %v1257_v29 = vmul.f32 %v2359_v44, %v2215_v51  ;;  %v3324_v19 = vrot.slane %v2474_v53, 4 }
 0x122   : > { %v2494_v36 = vsel %vm684_vm6, %v2463_v31, %v1277_v45  ;;  %v3325_v45 = vrot.slane %v2483_v47, 6 }
 0x123   : > { %v3399_v35 = vrot.slane %v2435_v4, 4 }
 0x125   : > { %875 = vrot.lane.b32.xlu0 %v2425_v32, %s3387_s25  ;;  %650 = vrot.lane.b32.xlu1 %v3316_v38, %s2021_s2  ;;  %v1190_v38 = vmul.f32 %v2260_v2, %v2373_v55 }
 0x127   : > { %v1194_v34 = vrot.slane %v1190_v38, 4  ;;  %v2516_v38 = vrot.slane %v1257_v29, 6  ;;  %v1311_v29 = vrot.slane %v1307_v48, 6  ;;  %v2573_v48 = vstv %s2478_s29 }
 0x128   : > { %3397 = vst [vmem:[#allocation34_spill] sm:$0xff] %v2573_v48 }
 0x129   : > { %891 = vrot.lane.b32.xlu0 %v2449_v3, %s3387_s25  ;;  %688 = vrot.lane.b32.xlu1 %v3322_v49, %s2022_s7  ;;  %v2508_v49 = vsel %vm163_vm2, %v2396_v5, %v3323_v1  ;;  %v2514_v44 = vsel %vm163_vm2, %v3324_v19, %v1194_v34  ;;  %v2530_v1 = vsel %vm684_vm6, %v3325_v45, %v1326_v33  ;;  %v2543_v19 = vstv %s2452_s4  ;;  %s1763_s4 = sld [smem:[#allocation5 + $0x23]] }
 0x12a   : > { %3390 = vst [vmem:[#allocation29_spill] sm:$0xff] %v2514_v44  ;;  %3392 = vst [vmem:[#allocation31_spill] sm:$0xff] %v2530_v1  ;;  %v2534_v34 = vmul.f32 %v2260_v2, %v2411_v18  ;;  %v2547_v33 = vsel %vm684_vm6, %v2516_v38, %v1262_v16  ;;  %v2551_v45 = vmul.f32 %v2523_v14, %v2215_v51 }
 0x12b   : > { %3396 = vst [vmem:[#allocation33_spill] sm:$0xff] %v2547_v33  ;;  %v2564_v16 = vmul.f32 %v2543_v19, %v2215_v51 }
 0x12c   : > { %3393 = vst [vmem:[#allocation32_spill] sm:$0xff] %v2534_v34  ;;  %v3337_v60 = vrot.slane %v2551_v45, 6 }
 0x12d   : > { %928 = vrot.lane.b32.xlu0 %v3394_v63, %s3387_s25  ;;  %704 = vrot.lane.b32.xlu1 %v3395_v46, %s2022_s7  ;;  %v3336_v63 = vrot.slane %v2534_v34, 6  ;;  %v1292_v46 = vrot.slane %v1288_v0, 6  ;;  %v2592_v34 = vmul.f32 %v2260_v2, %v2573_v48  ;;  %v2596_v0 = vmul.f32 %v2554_v7, %v2215_v51 }
 0x12f   : > { %v2578_v42 = vsel %vm684_vm6, %v3336_v63, %v1311_v29  ;;  %3402 = vst [vmem:[#allocation36_spill] sm:$0xff] %v2592_v34  ;;  %v2608_v29 = vstv %s2525_s13  ;;  %v2614_v63 = vmul.f32 %v2260_v2, %v2355_v41  ;;  %v3345_v48 = vrot.slane %v2596_v0, 4 }
 0x130   : > { %3398 = vst [vmem:[#allocation35_spill] sm:$0xff] %v2578_v42  ;;  %v2630_v34 = vmul.f32 %v2608_v29, %v2215_v51  ;;  %v1417_v33 = vmul.f32 %v2260_v2, %v2608_v29 }
 0x131   : > { %951 = vrot.lane.b32.xlu0 %v3399_v35, %s2023_s10  ;;  %741 = vrot.lane.b32.xlu1 %v3400_v13, %s2022_s7  ;;  %v2601_v35 = vsel %vm684_vm6, %v3337_v60, %v1292_v46  ;;  %v3340_v13 = vrot.slane %v2564_v16, 4  ;;  %3404 = vst [vmem:[#allocation38_spill] sm:$0xff] %v2614_v63  ;;  %v847_v46 = vrot.slane %v845_v61, 2  ;;  %v2626_v60 = vmul.f32 %v2260_v2, %v2357_v43 }
 0x132   : > { %3403 = vst [vmem:[#allocation37_spill] sm:$0xff] %v2601_v35  ;;  %v2639_v61 = vmul.f32 %v2260_v2, %v2296_v15  ;;  %v3348_v1 = vrot.slane %v2630_v34, 2 }
 0x133   : > { %3405 = vst [vmem:[#allocation39_spill] sm:$0xff] %v2626_v60  ;;  %v3347_v42 = vrot.slane %v2626_v60, 2 }
 0x134   : > { %v3352_v44 = vrot.slane %v2639_v61, 2 }
 0x135   : > { %981 = vrot.lane.b32.xlu0 %v3340_v13, %s2023_s10  ;;  %757 = vrot.lane.b32.xlu1 %v3341_v10, %s2022_s7  ;;  %v3406_v13 = vstv %s2230_s11  ;;  %v3344_v10 = vrot.slane %v2614_v63, 2  ;;  %v2659_v47 = vsel %vm503_vm5, %v2449_v3, %v3347_v42  ;;  %v1421_v63 = vrot.slane %v1417_v33, 2  ;;  %s1736_s11 = sld [smem:[#allocation5 + $0x8]] }
 0x136   : > { %v898_v35 = vmul.f32 %v3406_v13, %v2215_v51  ;;  %3408 = vst [vmem:[#allocation41_spill] sm:$0xff] %v2659_v47  ;;  %v3351_v47 = vstv %s2610_s16 }
 0x137   : > { %v2649_v13 = vsel %vm503_vm5, %v2425_v32, %v3344_v10  ;;  %v512_v10 = vmul.f32 %v2296_v15, %v2187_v37  ;;  %v2672_v42 = vsel %vm503_vm5, %v3348_v1, %v1421_v63  ;;  %v3353_v15 = vstv %s2622_s18 }
 0x138   : > { %3407 = vst [vmem:[#allocation40_spill] sm:$0xff] %v2649_v13  ;;  %v3349_v13 = vstv %s2603_s12  ;;  %3410 = vst [vmem:[#allocation42_spill] sm:$0xff] %v2672_v42  ;;  %v528_v63 = vmul.f32 %v2310_v21, %v2187_v37 }
 0x139   : > { %1004 = vrot.lane.b32.xlu0 %v3345_v48, %s2023_s10  ;;  %848 = vrot.lane.b32.xlu1 %v847_v46, %s3387_s25  ;;  %v900_v48 = vrot.slane %v898_v35, 2  ;;  %v3409_v46 = vstv %s2570_s28  ;;  %v1059_v33 = vmul.f32 %v3349_v13, %v2215_v51  ;;  %v1073_v35 = vmul.f32 %v2260_v2, %v3351_v47 }
 0x13a   : > { %v935_v60 = vmul.f32 %v3409_v46, %v2187_v37  ;;  %v516_v46 = vrot.slane %v512_v10, 2  ;;  %v3411_v13 = vstv %s2238_s15  ;;  %v532_v47 = vrot.slane %v528_v63, 2  ;;  %s1768_s15 = sld [smem:[#allocation5 + $0x28]] }
 0x13b   : > { %v1060_v1 = vadd.f32 %v1059_v33, %v3353_v15  ;;  %v988_v23 = vmul.f32 %v3411_v13, %v2215_v51  ;;  %v565_v10 = vmul.f32 %v2324_v26, %v2215_v51  ;;  %v3413_v33 = vstv %s2222_s9  ;;  %s1772_s9 = sld [smem:[#allocation5 + $0x2c]] }
 0x13c   : > { %v937_v42 = vrot.slane %v935_v60, 4  ;;  %v1083_v60 = vmul.f32 %v3413_v33, %v2215_v51  ;;  %v2704_v15 = vstv %s1736_s11  ;;  %v534_v13 = vsel %vm503_vm5, %v532_v47, %v2326_v27 }
 0x13d   : > { %901 = vrot.lane.b32.xlu1 %v900_v48, %s3387_s25  ;;  %1111 = vrot.lane.b32.xlu0 %v3352_v44, %s3386_s23  ;;  %v518_v48 = vsel %vm503_vm5, %v516_v46, %v2312_v22  ;;  %v2695_v9 = vadd.f32 %v1073_v35, %v1060_v1  ;;  %v990_v44 = vrot.slane %v988_v23, 4  ;;  %v2710_v1 = vmul.f32 %v2704_v15, %v2215_v51 }
 0x13e   : > { %v499_v23 = vmul.f32 %v2704_v15, %v2187_v37  ;;  %v1085_v35 = vrot.slane %v1083_v60, 2  ;;  %v3414_v46 = vrot.slane %v2331_v30, 2  ;;  %v553_v33 = vmul.f32 %v2381_v57, %v2215_v51 }
 0x13f   : > { %3412 = vst [vmem:[#allocation43_spill] sm:$0xff] %v2695_v9  ;;  %v505_v47 = vrot.slane %v2710_v1, 2  ;;  %v3415_v60 = vrot.slane %v2342_v39, 4  ;;  %v3470_v9 = vld [vmem:[#allocation21_spill] sm:$0xff] }
 0x141   : > { %938 = vrot.lane.b32.xlu1 %v937_v42, %s2023_s10  ;;  %519 = vrot.lane.b32.xlu0 %v518_v48, %s3386_s23  ;;  %v569_v42 = vrot.slane %v565_v10, 2  ;;  %v554_v48 = vmul.f32 %v2381_v57, %v2241_v59  ;;  %v504_v10 = vrot.slane %v499_v23, 2  ;;  %v606_v57 = vmul.f32 %v2373_v55, %v2187_v37 }
 0x142   : > { %v557_v23 = vrot.slane %v553_v33, 2  ;;  %v3416_v33 = vrot.slane %v2474_v53, 4  ;;  %v3418_v53 = vrot.slane %v2405_v11, 6  ;;  %v3420_v11 = vrot.slane %v2420_v24, 6 }
 0x143   : > { %v571_v63 = vsel %vm503_vm5, %v569_v42, %v3414_v46  ;;  %v506_v30 = vsel %vm503_vm5, %v504_v10, %v505_v47  ;;  %v558_v42 = vrot.slane %v554_v48, 2  ;;  %v3421_v24 = vrot.slane %v2502_v6, 6 }
 0x144   : > { %v2801_v6 = vstv %s1768_s15 }
 0x145   : > { %991 = vrot.lane.b32.xlu1 %v990_v44, %s2023_s10  ;;  %535 = vrot.lane.b32.xlu0 %v534_v13, %s3386_s23  ;;  %v618_v44 = vmul.f32 %v2353_v40, %v2187_v37  ;;  %v596_v13 = vsel %vm163_vm2, %v3415_v60, %v2422_v25  ;;  %v559_v39 = vsel %vm503_vm5, %v557_v23, %v558_v42 }
 0x147   : > { %v622_v40 = vrot.slane %v618_v44, 4  ;;  %v610_v44 = vrot.slane %v606_v57, 4  ;;  %v687_v57 = vsel %vm684_vm6, %v3418_v53, %v2516_v38  ;;  %v907_v53 = vmul.f32 %v2801_v6, %v2215_v51 }
 0x149   : > { %1086 = vrot.lane.b32.xlu1 %v1085_v35, %s3386_s23  ;;  %572 = vrot.lane.b32.xlu0 %v571_v63, %s3386_s23  ;;  %v644_v35 = vmul.f32 %v2369_v52, %v2241_v59  ;;  %v624_v46 = vsel %vm163_vm2, %v622_v40, %v2396_v5  ;;  %v2743_v63 = vstv %s1772_s9  ;;  %v612_v5 = vsel %vm163_vm2, %v610_v44, %v3416_v33 }
 0x14a   : > { %v660_v10 = vmul.f32 %v2743_v63, %v2241_v59  ;;  %v659_v55 = vmul.f32 %v2743_v63, %v2215_v51 }
 0x14b   : > { %v648_v48 = vrot.slane %v644_v35, 4  ;;  %v713_v35 = vmul.f32 %v2523_v14, %v2187_v37  ;;  %v3419_v14 = vrot.slane %v2551_v45, 6 }
 0x14c   : > { %v663_v42 = vrot.slane %v659_v55, 4 }
 0x14d   : > { %507 = vrot.lane.b32.xlu1 %v506_v30, %s3386_s23  ;;  %599 = vrot.lane.b32.xlu0 %v596_v13, %s2021_s2  ;;  %v3417_v30 = vrot.slane %v2400_v8, 4  ;;  %v664_v13 = vrot.slane %v660_v10, 4  ;;  %v735_v8 = vmul.f32 %v2411_v18, %v2241_v59  ;;  %v717_v23 = vrot.slane %v713_v35, 6 }
 0x14e   : > { %v751_v18 = vmul.f32 %v2379_v56, %v2241_v59  ;;  %v908_v35 = vmul.f32 %v2801_v6, %v2241_v59 }
 0x14f   : > { %v649_v60 = vsel %vm163_vm2, %v3417_v30, %v648_v48  ;;  %v665_v40 = vsel %vm163_vm2, %v663_v42, %v664_v13  ;;  %v703_v48 = vsel %vm684_vm6, %v3420_v11, %v2463_v31  ;;  %v739_v10 = vrot.slane %v735_v8, 6 }
 0x150   : > { %v755_v33 = vrot.slane %v751_v18, 6  ;;  %v3422_v13 = vrot.slane %v2568_v12, 6  ;;  %v3424_v12 = vrot.slane %v2457_v28, 2 }
 0x151   : > { %560 = vrot.lane.b32.xlu1 %v559_v39, %s3386_s23  ;;  %625 = vrot.lane.b32.xlu0 %v624_v46, %s2021_s2  ;;  %v866_v46 = vmul.f32 %v2355_v41, %v2187_v37  ;;  %v719_v39 = vsel %vm684_vm6, %v717_v23, %v3419_v14  ;;  %v882_v41 = vmul.f32 %v2357_v43, %v2187_v37 }
 0x152   : > { %v740_v55 = vsel %vm684_vm6, %v3421_v24, %v739_v10  ;;  %v854_v43 = vmul.f32 %v2608_v29, %v2187_v37  ;;  %v756_v42 = vsel %vm684_vm6, %v3422_v13, %v755_v33  ;;  %v911_v10 = vrot.slane %v907_v53, 2 }
 0x153   : > { %v870_v44 = vrot.slane %v866_v46, 2  ;;  %v886_v56 = vrot.slane %v882_v41, 2  ;;  %v3425_v46 = vrot.slane %v2630_v34, 2  ;;  %v3426_v34 = vrot.slane %v2435_v4, 4 }
 0x154   : > { %v2837_v41 = vstv %s1776_s21 }
 0x155   : > { %613 = vrot.lane.b32.xlu1 %v612_v5, %s2021_s2  ;;  %652 = vrot.lane.b32.xlu0 %v649_v60, %s2021_s2  ;;  %v872_v45 = vsel %vm503_vm5, %v870_v44, %v2425_v32  ;;  %v919_v5 = vmul.f32 %v2408_v17, %v2215_v51  ;;  %v945_v32 = vmul.f32 %v2371_v54, %v2215_v51 }
 0x156   : > { %v888_v60 = vsel %vm503_vm5, %v886_v56, %v2449_v3  ;;  %v2816_v3 = vstv %s1748_s27  ;;  %v1014_v33 = vmul.f32 %v2837_v41, %v2241_v59 }
 0x157   : > { %v923_v29 = vrot.slane %v919_v5, 2  ;;  %v949_v8 = vrot.slane %v945_v32, 4  ;;  %3423 = vst [vmem:[#allocation44_spill] sm:$0xff] %v2816_v3  ;;  %v961_v11 = vmul.f32 %v2816_v3, %v2215_v51  ;;  %v960_v28 = vmul.f32 %v2816_v3, %v2187_v37 }
 0x158   : > { %v1013_v5 = vmul.f32 %v2837_v41, %v2215_v51  ;;  %v3427_v32 = vrot.slane %v2564_v16, 4  ;;  %v3429_v16 = vrot.slane %v2596_v0, 4 }
 0x159   : > { %666 = vrot.lane.b32.xlu1 %v665_v40, %s2021_s2  ;;  %690 = vrot.lane.b32.xlu0 %v687_v57, %s2022_s7  ;;  %v858_v40 = vrot.slane %v854_v43, 2  ;;  %v925_v23 = vsel %vm503_vm5, %v923_v29, %v3424_v12  ;;  %v950_v44 = vsel %vm163_vm2, %v3426_v34, %v949_v8  ;;  %v965_v24 = vrot.slane %v961_v11, 4 }
 0x15a   : > { %v964_v4 = vrot.slane %v960_v28, 4  ;;  %v1092_v29 = vmul.f32 %v2260_v2, %v2704_v15  ;;  %v3430_v11 = vrot.slane %v2639_v61, 2  ;;  %v1134_v34 = vrot.slane %v2388_v62, 2 }
 0x15b   : > { %v860_v14 = vsel %vm503_vm5, %v858_v40, %v3425_v46  ;;  %v1017_v40 = vrot.slane %v1013_v5, 4  ;;  %v1151_v62 = vmul.f32 %v2260_v2, %v2324_v26 }
 0x15c   : > { %v966_v13 = vsel %vm163_vm2, %v964_v4, %v965_v24  ;;  %v1096_v46 = vrot.slane %v1092_v29, 2  ;;  %v1108_v0 = vsel %vm503_vm5, %v2312_v22, %v3430_v11 }
 0x15d   : > { %720 = vrot.lane.b32.xlu1 %v719_v39, %s2022_s7  ;;  %706 = vrot.lane.b32.xlu0 %v703_v48, %s2022_s7  ;;  %v912_v39 = vrot.slane %v908_v35, 2  ;;  %v972_v48 = vmul.f32 %v2543_v19, %v2187_v37  ;;  %v1018_v35 = vrot.slane %v1014_v33, 4  ;;  %v1155_v33 = vrot.slane %v1151_v62, 2 }
 0x15f   : > { %v976_v37 = vrot.slane %v972_v48, 4  ;;  %v1097_v48 = vsel %vm503_vm5, %v505_v47, %v1096_v46  ;;  %v1223_v47 = vmul.f32 %v2260_v2, %v2369_v52 }
 0x161   : > { %873 = vrot.lane.b32.xlu1 %v872_v45, %s3387_s25  ;;  %743 = vrot.lane.b32.xlu0 %v740_v55, %s2022_s7  ;;  %v913_v45 = vsel %vm503_vm5, %v911_v10, %v912_v39  ;;  %v998_v55 = vmul.f32 %v2554_v7, %v2241_v59 }
 0x163   : > { %v2797_v30 = vpop.permute.xlu0 %777  ;;  %v2832_v18 = vpop.permute.xlu1 %768 }
 0x165   : > { %889 = vrot.lane.b32.xlu1 %v888_v60, %s3387_s25  ;;  %759 = vrot.lane.b32.xlu0 %v756_v42, %s2022_s7  ;;  %v978_v60 = vsel %vm163_vm2, %v976_v37, %v3427_v32  ;;  %v1002_v42 = vrot.slane %v998_v55, 4  ;;  %v1227_v55 = vrot.slane %v1223_v47, 4 }
 0x167   : > { %v2814_v57 = vpop.permute.xlu0 %790  ;;  %v1003_v12 = vsel %vm163_vm2, %v3429_v16, %v1002_v42  ;;  %v2929_v42 = vstv %s1735_s14 }
 0x168   : > { %3433 = vst [vmem:[#allocation47_spill] sm:$0xff] %v2929_v42  ;;  %v463_v16 = vmul.f32 %v2929_v42, %v2215_v51 }
 0x169   : > { %926 = vrot.lane.b32.xlu1 %v925_v23, %s3387_s25  ;;  %861 = vrot.lane.b32.xlu0 %v860_v14, %s3387_s25  ;;  %v1019_v23 = vsel %vm163_vm2, %v1017_v40, %v1018_v35  ;;  %v1118_v14 = vmul.f32 %v2260_v2, %v2310_v21 }
 0x16b   : > { %v2844_v56 = vpop.permute.xlu0 %803  ;;  %v1122_v10 = vrot.slane %v1118_v14, 2 }
 0x16d   : > { %953 = vrot.lane.b32.xlu1 %v950_v44, %s2023_s10  ;;  %914 = vrot.lane.b32.xlu0 %v913_v45, %s3387_s25  ;;  %v1123_v61 = vsel %vm503_vm5, %v2326_v27, %v1122_v10  ;;  %v1224_v44 = vmul.f32 %v2367_v50, %v2369_v52  ;;  %v1152_v27 = vmul.f32 %v2367_v50, %v2324_v26 }
 0x16f   : > { %v2850_v43 = vpop.permute.xlu1 %779  ;;  %v2860_v53 = vpop.permute.xlu0 %814  ;;  %v1228_v52 = vrot.slane %v1224_v44, 4  ;;  %v1156_v37 = vrot.slane %v1152_v27, 2  ;;  %v3435_v44 = vld [vmem:[#allocation27_spill] sm:$0xff]  ;;  %v3437_v27 = vstv %s2306_s26  ;;  %s1742_s26 = sld [smem:[#allocation5 + $0xe]] }
 0x170   : > { %3428 = vst [vmem:[#allocation45_spill] sm:$0xff] %v2860_v53  ;;  %v3436_v62 = vrot.slane %v3435_v44, 4  ;;  %v3472_v53 = vstv %s2603_s12 }
 0x171   : > { %979 = vrot.lane.b32.xlu1 %v978_v60, %s2023_s10  ;;  %967 = vrot.lane.b32.xlu0 %v966_v13, %s2023_s10  ;;  %v1229_v5 = vsel %vm163_vm2, %v1227_v55, %v1228_v52  ;;  %v1157_v32 = vsel %vm503_vm5, %v1155_v33, %v1156_v37  ;;  %v2923_v60 = vstv %s1763_s4  ;;  %v3439_v33 = vld [vmem:[#allocation29_spill] sm:$0xff] }
 0x172   : > { %3432 = vst [vmem:[#allocation46_spill] sm:$0xff] %v2923_v60  ;;  %v481_v13 = vmul.f32 %v2923_v60, %v2241_v59 }
 0x173   : > { %v2862_v8 = vpop.permute.xlu1 %792 }
 0x175   : > { %1006 = vrot.lane.b32.xlu1 %v1003_v12, %s2023_s10  ;;  %1020 = vrot.lane.b32.xlu0 %v1019_v23, %s2023_s10  ;;  %v483_v12 = vadd.f32 %v481_v13, %v463_v16 }
 0x177   : > { %v2872_v15 = vpop.permute.xlu1 %805  ;;  %v2874_v39 = vpop.permute.xlu0 %825 }
 0x179   : > { %1109 = vrot.lane.b32.xlu1 %v1108_v0, %s3386_s23  ;;  %1098 = vrot.lane.b32.xlu0 %v1097_v48, %s3386_s23 }
 0x17b   : > { %v2885_v21 = vpop.permute.xlu1 %823  ;;  %v2887_v28 = vpop.permute.xlu0 %838 }
 0x17d   : > { %1124 = vrot.lane.b32.xlu1 %v1123_v61, %s3386_s23  ;;  %1135 = vrot.lane.b32.xlu0 %v1134_v34, %s3386_s23  ;;  %v3434_v34 = vld [vmem:[#allocation23_spill] sm:$0xff] }
 0x17e   : > { %v1217_v61 = vrot.slane %v3434_v34, 4 }
 0x17f   : > { %v2894_v22 = vpop.permute.xlu1 %836  ;;  %v2896_v1 = vpop.permute.xlu0 %493 }
 0x181   : > { %1181 = vrot.lane.b32.xlu1 %v2422_v25, %s2021_s2  ;;  %1183 = vrot.lane.b32.xlu0 %v2441_v58, %s2021_s2  ;;  %v3431_v25 = vstv %s2252_s17  ;;  %s3446_s17 = smov 120  }
 0x182   : > { %v1166_v58 = vmul.f32 %v3431_v25, %v2215_v51 }
 0x183   : > { %v522_v45 = vpop.permute.xlu1 %521  ;;  %v2910_v24 = vpop.permute.xlu0 %547 }
 0x184   : > { %v1168_v40 = vrot.slane %v1166_v58, 4  ;;  %v526_v14 = vadd.f32 %v522_v45, %v483_v12 }
 0x185   : > { %1126 = vrot.lane.b32.xlu1 %v1122_v10, %s3386_s23  ;;  %1230 = vrot.lane.b32.xlu0 %v1227_v55, %s2021_s2 }
 0x187   : > { %v2914_v26 = vpop.permute.xlu1 %537  ;;  %v2916_v4 = vpop.permute.xlu0 %584 }
 0x189   : > { %1232 = vrot.lane.b32.xlu1 %v1229_v5, %s2021_s2  ;;  %1158 = vrot.lane.b32.xlu0 %v1157_v32, %s3386_s23 }
 0x18b   : > { %v575_v35 = vpop.permute.xlu1 %574  ;;  %v2931_v29 = vpop.permute.xlu0 %637 }
 0x18c   : > { %v579_v59 = vadd.f32 %v575_v35, %v526_v14  ;;  %v1238_v35 = vmul.f32 %v2260_v2, %v2743_v63 }
 0x18d   : > { %1160 = vrot.lane.b32.xlu1 %v1156_v37, %s3386_s23  ;;  %1169 = vrot.lane.b32.xlu0 %v1168_v40, %s2021_s2  ;;  %v3440_v37 = vld [vmem:[#allocation28_spill] sm:$0xff]  ;;  %v1239_v40 = vmul.f32 %v2367_v50, %v2743_v63 }
 0x18e   : > { %v3441_v25 = vrot.slane %v3440_v37, 6  ;;  %v1242_v14 = vrot.slane %v1238_v35, 4 }
 0x18f   : > { %v2937_v23 = vpop.permute.xlu1 %597  ;;  %v2939_v46 = vpop.permute.xlu0 %674 }
 0x191   : > { %1147 = vrot.lane.b32.xlu1 %v2470_v20, %s3386_s23  ;;  %1279 = vrot.lane.b32.xlu0 %v2463_v31, %s2022_s7 }
 0x193   : > { %v628_v11 = vpop.permute.xlu1 %627  ;;  %v2945_v0 = vpop.permute.xlu0 %728 }
 0x194   : > { %v632_v48 = vadd.f32 %v628_v11, %v579_v59  ;;  %v1243_v59 = vrot.slane %v1239_v40, 4  ;;  %v3444_v11 = vld [vmem:[#allocation33_spill] sm:$0xff] }
 0x195   : > { %1281 = vrot.lane.b32.xlu1 %v2494_v36, %s2022_s7  ;;  %1207 = vrot.lane.b32.xlu0 %v2508_v49, %s2021_s2  ;;  %v1249_v49 = vmul.f32 %v3437_v27, %v2215_v51  ;;  %v3450_v27 = vld [vmem:[#allocation30_spill] sm:$0xff] }
 0x196   : > { %v678_v10 = vadd.f32 %v2939_v46, %v632_v48  ;;  %v1244_v34 = vsel %vm163_vm2, %v1242_v14, %v1243_v59  ;;  %v3457_v14 = vld [vmem:[#allocation37_spill] sm:$0xff] }
 0x197   : > { %v2953_v20 = vpop.permute.xlu1 %650  ;;  %v876_v47 = vpop.permute.xlu0 %875  ;;  %v1251_v5 = vrot.slane %v1249_v49, 6 }
 0x198   : > { %v732_v31 = vadd.f32 %v2945_v0, %v678_v10 }
 0x199   : > { %1209 = vrot.lane.b32.xlu1 %v3436_v62, %s2021_s2  ;;  %1218 = vrot.lane.b32.xlu0 %v1217_v61, %s2021_s2  ;;  %v3447_v61 = vld [vmem:[#allocation20_spill] sm:$0xff] }
 0x19a   : > { %v784_v36 = vadd.f32 %v2850_v43, %v732_v31  ;;  %v3448_v31 = vld [vmem:[#allocation24_spill] sm:$0xff] }
 0x19b   : > { %v2964_v45 = vpop.permute.xlu1 %688  ;;  %v2966_v55 = vpop.permute.xlu0 %891  ;;  %v1300_v44 = vrot.slane %v3448_v31, 6 }
 0x19c   : > { %3438 = vst [vmem:[#allocation23_spill] sm:$0xff] %v2966_v55  ;;  %v830_v52 = vadd.f32 %v2874_v39, %v784_v36  ;;  %v3442_v39 = vld [vmem:[#allocation31_spill] sm:$0xff] }
 0x19d   : > { %1196 = vrot.lane.b32.xlu1 %v3439_v33, %s2021_s2  ;;  %1328 = vrot.lane.b32.xlu0 %v3441_v25, %s2022_s7 }
 0x19e   : > { %v880_v58 = vadd.f32 %v876_v47, %v830_v52  ;;  %v1062_v47 = vmul.f32 %v2260_v2, %v2929_v42  ;;  %v3451_v52 = vstv %s2461_s6 }
 0x19f   : > { %v2974_v32 = vpop.permute.xlu1 %704  ;;  %v929_v43 = vpop.permute.xlu0 %928  ;;  %v1408_v33 = vmul.f32 %v3451_v52, %v2215_v51 }
 0x1a0   : > { %v933_v13 = vadd.f32 %v929_v43, %v880_v58 }
 0x1a1   : > { %1330 = vrot.lane.b32.xlu1 %v3442_v39, %s2022_s7  ;;  %1252 = vrot.lane.b32.xlu0 %v1251_v5, %s2022_s7  ;;  %v3453_v5 = vld [vmem:[#allocation32_spill] sm:$0xff]  ;;  %v1410_v35 = vrot.slane %v1408_v33, 2 }
 0x1a2   : > { %v3454_v43 = vrot.slane %v3453_v5, 6 }
 0x1a3   : > { %v2983_v16 = vpop.permute.xlu1 %741  ;;  %v2985_v12 = vpop.permute.xlu0 %951 }
 0x1a4   : > { %3443 = vst [vmem:[#allocation27_spill] sm:$0xff] %v2985_v12 }
 0x1a5   : > { %1264 = vrot.lane.b32.xlu1 %v2516_v38, %s2022_s7  ;;  %1266 = vrot.lane.b32.xlu0 %v3444_v11, %s2022_s7  ;;  %v1076_v38 = vmul.f32 %v2367_v50, %v2923_v60  ;;  %v3030_v11 = vld [vmem:[#allocation3 + $0x8] sm:$0xff] }
 0x1a7   : > { %v2991_v48 = vpop.permute.xlu1 %757  ;;  %v982_v63 = vpop.permute.xlu0 %981  ;;  %v1078_v49 = vadd.f32 %v1076_v38, %v1062_v47  ;;  %v3460_v47 = vld [vmem:[#allocation34_spill] sm:$0xff] }
 0x1a8   : > { %v2993_v10 = vadd.f32 %v982_v63, %v933_v13  ;;  %v3455_v13 = vld [vmem:[#allocation35_spill] sm:$0xff]  ;;  %v3459_v63 = vld [vmem:[#allocation17_spill] sm:$0xff]  ;;  %v1069_v38 = vmul.f32 %v3030_v11, %v3460_v47 }
 0x1a9   : > { %1245 = vrot.lane.b32.xlu1 %v1244_v34, %s2021_s2  ;;  %1370 = vrot.lane.b32.xlu0 %v3447_v61, %s3446_s17  ;;  %v1342_v34 = vmul.f32 %v3030_v11, %v3459_v63  ;;  %v1343_v61 = vmul.f32 %v2260_v2, %v3459_v63  ;;  %s1770_s2 = sld [smem:[#allocation5 + $0x2a]]  ;;  %v3466_v63 = vstv %s2178_s24  ;;  %s1712_s24 = sshll.u32 %s2164_s8, 4 }
 0x1aa   : > { %3445 = vst [vmem:[#allocation29_spill] sm:$0xff] %v2993_v10  ;;  %v1397_v10 = vmul.f32 %v2367_v50, %v3470_v9  ;;  %s3235_s23 = scalar_lea.vmem [#allocation10], %s1712_s24 }
 0x1ab   : > { %v3004_v62 = vpop.permute.xlu1 %848  ;;  %v3006_v36 = vpop.permute.xlu0 %1004 }
 0x1ac   : > { %3449 = vst [vmem:[#allocation28_spill] sm:$0xff] %v3006_v36 }
 0x1ad   : > { %1372 = vrot.lane.b32.xlu1 %v3450_v27, %s3446_s17  ;;  %1301 = vrot.lane.b32.xlu0 %v1300_v44, %s2022_s7  ;;  %v3461_v27 = vld [vmem:[#allocation18_spill] sm:$0xff] }
 0x1ae   : > { %v1355_v52 = vmul.f32 %v2260_v2, %v3461_v27  ;;  %v3468_v2 = vld [vmem:[#allocation19_spill] sm:$0xff] }
 0x1af   : > { %v3014_v37 = vpop.permute.xlu1 %901  ;;  %v1112_v25 = vpop.permute.xlu0 %1111 }
 0x1b0   : > { %v3016_v58 = vadd.f32 %v1112_v25, %v1078_v49  ;;  %v1354_v49 = vmul.f32 %v3030_v11, %v3461_v27  ;;  %v3463_v25 = vld [vmem:[#allocation36_spill] sm:$0xff]  ;;  %v3065_v27 = vstv %s1742_s26 }
 0x1b1   : > { %1313 = vrot.lane.b32.xlu1 %v3454_v43, %s2022_s7  ;;  %1315 = vrot.lane.b32.xlu0 %v3455_v13, %s2022_s7  ;;  %v3465_v43 = vld [vmem:[#allocation25_spill] sm:$0xff]  ;;  %3469 = vst [vmem:[#allocation35_spill] sm:$0xff] %v3065_v27 }
 0x1b2   : > { %3452 = vst [vmem:[#allocation31_spill] sm:$0xff] %v3016_v58  ;;  %v1459_v13 = vrot.slane %v3465_v43, 2  ;;  %v3071_v43 = vld [vmem:[#allocation3 + $0x10] sm:$0xff] }
 0x1b3   : > { %v3023_v40 = vpop.permute.xlu1 %938  ;;  %v520_v39 = vpop.permute.xlu0 %519  ;;  %v1876_v58 = vld [vmem:[#allocation3 + $0x10] sm:$0xf]  ;;  %v1396_v36 = vmul.f32 %v3071_v43, %v3470_v9 }
 0x1b4   : > { %3456 = vst [vmem:[#allocation33_spill] sm:$0xff] %v3023_v40 }
 0x1b5   : > { %1294 = vrot.lane.b32.xlu1 %v3457_v14, %s2022_s7  ;;  %1411 = vrot.lane.b32.xlu0 %v1410_v35, %s3387_s25  ;;  %s1785_s7 = sshll.u32 %s1997_s20, 8  ;;  %s2024_s20 = smov [#allocation10]  }
 0x1b6   : > { %s3247_s13 = scalar_lea.hbm %s3303_s3, %s1785_s7  ;;  %s1925_s12 = sshll.u32 %s2024_s20, 4  ;;  %s1926_s12 = int_to_ptr.vmem [resolvable:$false] %s1925_s12 }
 0x1b7   : > { %v3028_v51 = vpop.permute.xlu1 %991  ;;  %v536_v59 = vpop.permute.xlu0 %535 }
 0x1b8   : > { %3458 = vst [vmem:[#allocation20_spill] sm:$0xff] %v3028_v51  ;;  %v3085_v51 = vmul.f32 %v3030_v11, %v3065_v27 }
 0x1b9   : > { %1346 = vrot.lane.b32.xlu1 %v1342_v34, %s3446_s17  ;;  %1348 = vrot.lane.b32.xlu0 %v1343_v61, %s3446_s17  ;;  %v1336_v34 = vmul.f32 %v3030_v11, %v3466_v63  ;;  %v3059_v61 = vstv %s1770_s2  ;;  %v1384_v63 = vmul.f32 %v3071_v43, %v3468_v2 }
 0x1ba   : > { %3467 = vst [vmem:[#allocation32_spill] sm:$0xff] %v3059_v61  ;;  %3471 = vst [vmem:[#allocation37_spill] sm:$0xff] %v3085_v51 }
 0x1bb   : > { %v1087_v31 = vpop.permute.xlu1 %1086  ;;  %v573_v44 = vpop.permute.xlu0 %572 }
 0x1bc   : > { %v3044_v33 = vadd.f32 %v1087_v31, %v1069_v38  ;;  %v3047_v5 = vadd.f32 %v1087_v31, %v3463_v25  ;;  %v1385_v31 = vmul.f32 %v2367_v50, %v3468_v2 }
 0x1bd   : > { %1358 = vrot.lane.b32.xlu1 %v1354_v49, %s3446_s17  ;;  %1360 = vrot.lane.b32.xlu0 %v1355_v52, %s3446_s17  ;;  %v485_v49 = vmul.f32 %v3030_v11, %v3059_v61 }
 0x1be   : > { %3462 = vst [vmem:[#allocation24_spill] sm:$0xff] %v3044_v33  ;;  %3464 = vst [vmem:[#allocation30_spill] sm:$0xff] %v3047_v5  ;;  %v1877_v5 = vld [vmem:[#allocation3] sm:$0xff] }
 0x1bf   : > { %v3052_v35 = vpop.permute.xlu1 %507  ;;  %v3054_v14 = vpop.permute.xlu0 %599  ;;  %v467_v33 = vmul.f32 %v1877_v5, %v3065_v27  ;;  %v462_v2 = vmul.f32 %v1877_v5, %v2929_v42  ;;  %v1500_v27 = vmul.f32 %v3071_v43, %v2371_v54 }
 0x1c1   : > { %1338 = vrot.lane.b32.xlu1 %v1336_v34, %s3446_s17  ;;  %1460 = vrot.lane.b32.xlu0 %v1459_v13, %s3387_s25  ;;  %v486_v34 = vmul.f32 %v1876_v58, %v3059_v61  ;;  %v480_v13 = vmul.f32 %v3030_v11, %v2923_v60  ;;  %v487_v58 = vadd.f32 %v485_v49, %v467_v33  ;;  %v1504_v12 = vrot.slane %v1500_v27, 4 }
 0x1c3   : > { %v3069_v52 = vpop.permute.xlu1 %560  ;;  %v626_v25 = vpop.permute.xlu0 %625  ;;  %v488_v60 = vadd.f32 %v486_v34, %v3085_v51  ;;  %v482_v3 = vadd.f32 %v480_v13, %v462_v2  ;;  %v541_v42 = vadd.f32 %v536_v59, %v487_v58  ;;  %v3474_v2 = vld [vmem:[#allocation22_spill] sm:$0xff] }
 0x1c5   : > { %1388 = vrot.lane.b32.xlu1 %v1384_v63, %s3446_s17  ;;  %1390 = vrot.lane.b32.xlu0 %v1385_v31, %s3446_s17  ;;  %v1499_v63 = vmul.f32 %v3030_v11, %v2371_v54  ;;  %v472_v31 = vmul.f32 %v1877_v5, %v3460_v47  ;;  %v542_v9 = vadd.f32 %v2914_v26, %v488_v60  ;;  %v3475_v60 = vstv %s2622_s18 }
 0x1c6   : > { %v525_v49 = vadd.f32 %v520_v39, %v482_v3  ;;  %v459_v47 = vmul.f32 %v1877_v5, %v3472_v53  ;;  %v587_v59 = vadd.f32 %v2916_v4, %v541_v42  ;;  %v497_v3 = vadd.f32 %v1069_v38, %v2896_v1 }
 0x1c7   : > { %v614_v61 = vpop.permute.xlu1 %613  ;;  %v653_v40 = vpop.permute.xlu0 %652  ;;  %v496_v33 = vadd.f32 %v2896_v1, %v472_v31  ;;  %v1503_v51 = vrot.slane %v1499_v63, 4  ;;  %v588_v53 = vadd.f32 %v2916_v4, %v542_v9  ;;  %v3476_v1 = vld [vmem:[#allocation40_spill] sm:$0xff] }
 0x1c8   : > { %v578_v13 = vadd.f32 %v573_v44, %v525_v49  ;;  %v460_v39 = vadd.f32 %v459_v47, %v3475_v60  ;;  %v551_v58 = vadd.f32 %v2910_v24, %v497_v3  ;;  %v640_v31 = vadd.f32 %v2931_v29, %v587_v59  ;;  %v3482_v60 = vld [vmem:[#allocation42_spill] sm:$0xff] }
 0x1c9   : > { %1400 = vrot.lane.b32.xlu1 %v1396_v36, %s3446_s17  ;;  %1402 = vrot.lane.b32.xlu0 %v1397_v10, %s3446_s17  ;;  %v550_v54 = vadd.f32 %v2910_v24, %v496_v33  ;;  %v3473_v36 = vstv %s2610_s16  ;;  %v1505_v63 = vsel %vm163_vm2, %v1503_v51, %v1504_v12  ;;  %v641_v38 = vadd.f32 %v2931_v29, %v588_v53  ;;  %s1927_s16 = scalar_lea.vmem %s1926_s12, 512 }
 0x1ca   : > { %v477_v10 = vmul.f32 %v3030_v11, %v3473_v36  ;;  %v631_v5 = vadd.f32 %v626_v25, %v578_v13  ;;  %v1476_v3 = vmul.f32 %v3071_v43, %v2408_v17 }
 0x1cb   : > { %v667_v55 = vpop.permute.xlu1 %666  ;;  %v691_v34 = vpop.permute.xlu0 %690  ;;  %v603_v26 = vadd.f32 %v2937_v23, %v550_v54  ;;  %v604_v23 = vadd.f32 %v3054_v14, %v551_v58  ;;  %v694_v14 = vadd.f32 %v2964_v45, %v640_v31 }
 0x1cc   : > { %v478_v33 = vadd.f32 %v477_v10, %v460_v39  ;;  %v677_v24 = vadd.f32 %v2939_v46, %v631_v5  ;;  %v695_v47 = vadd.f32 %v691_v34, %v641_v38  ;;  %v3479_v46 = vld [vmem:[#allocation41_spill] sm:$0xff]  ;;  %v1480_v31 = vrot.slane %v1476_v3, 2 }
 0x1cd   : > { %1380 = vrot.lane.b32.xlu1 %v3474_v2, %s3446_s17  ;;  %1506 = vrot.lane.b32.xlu0 %v1503_v51, %s2023_s10  ;;  %v656_v44 = vadd.f32 %v2953_v20, %v603_v26  ;;  %v1549_v51 = vmul.f32 %v2367_v50, %v2554_v7  ;;  %v657_v49 = vadd.f32 %v653_v40, %v604_v23 }
 0x1ce   : > { %v510_v20 = vadd.f32 %v3052_v35, %v478_v33  ;;  %v3477_v35 = vld [vmem:[#allocation38_spill] sm:$0xff]  ;;  %v747_v26 = vadd.f32 %v2983_v16, %v694_v14  ;;  %v3485_v14 = vld [vmem:[#allocation23_spill] sm:$0xff] }
 0x1cf   : > { %v721_v27 = vpop.permute.xlu1 %720  ;;  %v707_v42 = vpop.permute.xlu0 %706  ;;  %v710_v4 = vadd.f32 %v2974_v32, %v656_v44  ;;  %v1548_v32 = vmul.f32 %v3071_v43, %v2554_v7  ;;  %v3478_v54 = vrot.slane %v3477_v35, 2  ;;  %v1553_v36 = vrot.slane %v1549_v51, 4  ;;  %v3140_v7 = vld [vmem:[#allocation3 + $0x18] sm:$0xf] }
 0x1d0   : > { %v563_v29 = vadd.f32 %v3069_v52, %v510_v20  ;;  %v711_v59 = vadd.f32 %v707_v42, %v657_v49  ;;  %v1477_v45 = vmul.f32 %v3140_v7, %v2408_v17  ;;  %v1466_v16 = vmul.f32 %v3140_v7, %v2801_v6 }
 0x1d1   : > { %1508 = vrot.lane.b32.xlu1 %v1505_v63, %s2023_s10  ;;  %1434 = vrot.lane.b32.xlu0 %v3476_v1, %s3387_s25  ;;  %v763_v9 = vadd.f32 %v2991_v48, %v710_v4  ;;  %v731_v48 = vadd.f32 %v2945_v0, %v677_v24  ;;  %v1552_v2 = vrot.slane %v1548_v32, 4  ;;  %v3480_v0 = vld [vmem:[#allocation39_spill] sm:$0xff]  ;;  %v796_v33 = vadd.f32 %v2814_v57, %v747_v26 }
 0x1d2   : > { %v616_v40 = vadd.f32 %v614_v61, %v563_v29  ;;  %v3481_v61 = vrot.slane %v3480_v0, 2  ;;  %v1470_v51 = vrot.slane %v1466_v16, 2 }
 0x1d3   : > { %v874_v25 = vpop.permute.xlu1 %873  ;;  %v744_v12 = vpop.permute.xlu0 %743  ;;  %v809_v52 = vadd.f32 %v2844_v56, %v763_v9  ;;  %v783_v42 = vadd.f32 %v2797_v30, %v731_v48  ;;  %v1554_v63 = vsel %vm163_vm2, %v1552_v2, %v1553_v36  ;;  %v3167_v30 = vmul.f32 %v3140_v7, %v2837_v41  ;;  %v3487_v48 = vld [vmem:[#allocation44_spill] sm:$0xff]  ;;  %v3488_v36 = vld [vmem:[#allocation47_spill] sm:$0xff] }
 0x1d4   : > { %v748_v50 = vadd.f32 %v744_v12, %v695_v47  ;;  %v669_v53 = vadd.f32 %v667_v55, %v616_v40  ;;  %v1481_v55 = vrot.slane %v1477_v45, 2  ;;  %v1526_v9 = vmul.f32 %v3071_v43, %v2543_v19 }
 0x1d5   : > { %1436 = vrot.lane.b32.xlu1 %v3478_v54, %s3387_s25  ;;  %1449 = vrot.lane.b32.xlu0 %v3479_v46, %s3387_s25  ;;  %v851_v58 = vadd.f32 %v3004_v62, %v809_v52  ;;  %v829_v57 = vadd.f32 %v2885_v21, %v783_v42  ;;  %v842_v47 = vadd.f32 %v2894_v22, %v796_v33  ;;  %v1568_v21 = vrot.slane %v3167_v30, 4  ;;  %v3486_v46 = vld [vmem:[#allocation45_spill] sm:$0xff]  ;;  %v3489_v52 = vld [vmem:[#allocation46_spill] sm:$0xff] }
 0x1d6   : > { %v797_v39 = vadd.f32 %v2862_v8, %v748_v50  ;;  %v723_v5 = vadd.f32 %v721_v27, %v669_v53  ;;  %v1465_v8 = vmul.f32 %v3071_v43, %v2801_v6  ;;  %v1482_v24 = vsel %vm503_vm5, %v1480_v31, %v1481_v55  ;;  %v3490_v53 = vld [vmem:[#allocation28_spill] sm:$0xff] }
 0x1d7   : > { %v890_v34 = vpop.permute.xlu1 %889  ;;  %v760_v13 = vpop.permute.xlu0 %759  ;;  %v904_v1 = vadd.f32 %v3014_v37, %v851_v58  ;;  %v879_v49 = vadd.f32 %v874_v25, %v829_v57  ;;  %v1515_v40 = vmul.f32 %v3071_v43, %v3487_v48  ;;  %v1061_v45 = vmul.f32 %v3030_v11, %v3488_v36  ;;  %v3495_v57 = vld [vmem:[#allocation29_spill] sm:$0xff] }
 0x1d8   : > { %v764_v10 = vadd.f32 %v760_v13, %v711_v59  ;;  %v843_v4 = vadd.f32 %v2887_v28, %v797_v39  ;;  %v771_v6 = vadd.f32 %v2832_v18, %v723_v5  ;;  %v1469_v12 = vrot.slane %v1465_v8, 2 }
 0x1d9   : > { %1451 = vrot.lane.b32.xlu1 %v3481_v61, %s3387_s25  ;;  %1423 = vrot.lane.b32.xlu0 %v3482_v60, %s3387_s25  ;;  %v1525_v18 = vmul.f32 %v3030_v11, %v2543_v19  ;;  %v895_v54 = vadd.f32 %v890_v34, %v842_v47  ;;  %v1530_v13 = vrot.slane %v1526_v9, 4  ;;  %v1514_v3 = vmul.f32 %v3030_v11, %v3487_v48  ;;  %v3491_v61 = vld [vmem:[#allocation33_spill] sm:$0xff] }
 0x1da   : > { %v810_v56 = vadd.f32 %v2872_v15, %v764_v10  ;;  %v3483_v15 = vstv %s2570_s28  ;;  %v896_v29 = vadd.f32 %v3485_v14, %v843_v4  ;;  %v817_v22 = vadd.f32 %v3486_v46, %v771_v6  ;;  %s1606_s28 = scalar_lea.sflag [#allocation9], %s2164_s8 }
 0x1db   : > { %v927_v44 = vpop.permute.xlu1 %926  ;;  %v862_v17 = vpop.permute.xlu0 %861  ;;  %v1491_v27 = vmul.f32 %v3030_v11, %v3483_v15  ;;  %v1471_v19 = vsel %vm503_vm5, %v1469_v12, %v1470_v51  ;;  %v1075_v10 = vmul.f32 %v3071_v43, %v3489_v52  ;;  %v1529_v34 = vrot.slane %v1525_v18, 4 }
 0x1dc   : > { %v852_v23 = vadd.f32 %v3004_v62, %v810_v56  ;;  %v3484_v62 = vld [vmem:[#allocation27_spill] sm:$0xff]  ;;  %v932_v25 = vadd.f32 %v927_v44, %v879_v49  ;;  %v942_v60 = vadd.f32 %v3491_v61, %v896_v29  ;;  %v1563_v39 = vmul.f32 %v3071_v43, %v2837_v41  ;;  %v3492_v56 = vld [vmem:[#allocation26_spill] sm:$0xff]  ;;  %v3493_v41 = vld [vmem:[#allocation32_spill] sm:$0xff] }
 0x1dd   : > { %1555 = vrot.lane.b32.xlu1 %v1552_v2, %s2023_s10  ;;  %1557 = vrot.lane.b32.xlu0 %v1554_v63, %s2023_s10  ;;  %v1493_v28 = vrot.slane %v1491_v27, 4  ;;  %v957_v32 = vadd.f32 %v3484_v62, %v904_v1  ;;  %v864_v2 = vadd.f32 %v862_v17, %v817_v22  ;;  %v1542_v5 = vrot.slane %v3492_v56, 4  ;;  %v3494_v1 = vld [vmem:[#allocation20_spill] sm:$0xff] }
 0x1de   : > { %v905_v35 = vadd.f32 %v3014_v37, %v852_v23  ;;  %v941_v42 = vadd.f32 %v3491_v61, %v895_v54  ;;  %v1519_v16 = vrot.slane %v1515_v40, 4  ;;  %v1531_v63 = vsel %vm163_vm2, %v1529_v34, %v1530_v13  ;;  %v3498_v40 = vld [vmem:[#allocation24_spill] sm:$0xff] }
 0x1df   : > { %v954_v38 = vpop.permute.xlu1 %953  ;;  %v915_v20 = vpop.permute.xlu0 %914  ;;  %v1010_v26 = vadd.f32 %v3490_v53, %v957_v32  ;;  %v1077_v11 = vadd.f32 %v1075_v10, %v1061_v45  ;;  %v1518_v33 = vrot.slane %v1514_v3, 4  ;;  %v1079_v15 = vmul.f32 %v3071_v43, %v3493_v41 }
 0x1e0   : > { %v958_v0 = vadd.f32 %v954_v38, %v905_v35  ;;  %v917_v44 = vadd.f32 %v915_v20, %v864_v2  ;;  %v995_v4 = vadd.f32 %v3494_v1, %v942_v60  ;;  %v1567_v6 = vrot.slane %v1563_v39, 4  ;;  %v3497_v35 = vld [vmem:[#allocation37_spill] sm:$0xff]  ;;  %v3500_v2 = vld [vmem:[#allocation35_spill] sm:$0xff] }
 0x1e1   : > { %1483 = vrot.lane.b32.xlu1 %v1482_v24, %s3387_s25  ;;  %1485 = vrot.lane.b32.xlu0 %v1481_v55, %s3387_s25  ;;  %v1033_v27 = vrot.slane %v1010_v26, 2  ;;  %v1027_v38 = vrot.slane %v3495_v57, 2  ;;  %v994_v20 = vadd.f32 %v3494_v1, %v941_v42  ;;  %v1520_v9 = vsel %vm163_vm2, %v1518_v33, %v1519_v16 }
 0x1e2   : > { %v1081_v54 = vadd.f32 %v1079_v15, %v3497_v35  ;;  %v1080_v10 = vmul.f32 %v3140_v7, %v3493_v41 }
 0x1e3   : > { %v980_v59 = vpop.permute.xlu1 %979  ;;  %v968_v50 = vpop.permute.xlu0 %967 }
 0x1e4   : > { %v985_v37 = vadd.f32 %v980_v59, %v932_v25  ;;  %v970_v8 = vadd.f32 %v968_v50, %v917_v44  ;;  %v1569_v59 = vsel %vm163_vm2, %v1567_v6, %v1568_v21 }
 0x1e5   : > { %1494 = vrot.lane.b32.xlu1 %v1493_v28, %s2023_s10  ;;  %1472 = vrot.lane.b32.xlu0 %v1471_v19, %s3387_s25  ;;  %v3496_v28 = vld [vmem:[#allocation43_spill] sm:$0xff]  ;;  %s1619_s25 = sshll.u32 %s3235_s23, 4  ;;  %s3249_s25 = int_to_ptr.vmem [resolvable:$true] %s1619_s25 }
 0x1e6   : > { %v1026_v31 = vrot.slane %v985_v37, 2  ;;  %v1066_v37 = vmul.f32 %v3071_v43, %v3500_v2  ;;  %v3501_v43 = vld [vmem:[#allocation31_spill] sm:$0xff]  ;;  %p1928_p12 = scmp.lt.s32.totalorder %s3249_s25, %s1926_s12 }
 0x1e7   : > { %v1007_v17 = vpop.permute.xlu1 %1006  ;;  %v1021_v55 = vpop.permute.xlu0 %1020 }
 0x1e8   : > { %v1011_v58 = vadd.f32 %v1007_v17, %v958_v0  ;;  %v1023_v24 = vadd.f32 %v1021_v55, %v970_v8  ;;  %v1028_v14 = vsel %vm503_vm5, %v1026_v31, %v1027_v38  ;;  %v1082_v26 = vadd.f32 %v1080_v10, %v1066_v37 }
 0x1e9   : > { %1532 = vrot.lane.b32.xlu1 %v1531_v63, %s2023_s10  ;;  %1534 = vrot.lane.b32.xlu0 %v1530_v13, %s2023_s10  ;;  %v3499_v13 = vld [vmem:[#allocation30_spill] sm:$0xff] }
 0x1ea   : > { %v1034_v23 = vrot.slane %v1011_v58, 2  ;;  %v1030_v50 = vadd.f32 %v1028_v14, %v1023_v24 }
 0x1eb   : > { %v1110_v12 = vpop.permute.xlu1 %1109  ;;  %v1099_v51 = vpop.permute.xlu0 %1098 }
 0x1ec   : > { %v1035_v49 = vsel %vm503_vm5, %v1033_v27, %v1034_v23  ;;  %v1039_v47 = vadd.f32 %v1034_v23, %v995_v4  ;;  %v1115_v18 = vadd.f32 %v1110_v12, %v1077_v11  ;;  %v1101_v62 = vadd.f32 %v1099_v51, %v3496_v28 }
 0x1ed   : > { %v1038_v32 = vadd.f32 %v1035_v49, %v994_v20  ;;  %1543 = vrot.lane.b32.xlu1 %v1542_v5, %s2023_s10  ;;  %1521 = vrot.lane.b32.xlu0 %v1520_v9, %s2023_s10 }
 0x1ee   : > { %v1043_v29 = vrot.slane %v1039_v47, 4 }
 0x1ef   : > { %v1042_v25 = vrot.slane %v1038_v32, 4  ;;  %v1125_v46 = vpop.permute.xlu1 %1124  ;;  %v1136_v22 = vpop.permute.xlu0 %1135 }
 0x1f0   : > { %v1130_v48 = vadd.f32 %v1125_v46, %v1081_v54  ;;  %v1138_v19 = vadd.f32 %v1136_v22, %v3498_v40  ;;  %v1139_v36 = vadd.f32 %v1136_v22, %v3499_v13 }
 0x1f1   : > { %v1044_v45 = vsel %vm163_vm2, %v1042_v25, %v1043_v29  ;;  %1570 = vrot.lane.b32.xlu1 %v1569_v59, %s2023_s10  ;;  %s1921_s10 = scalar_lea.vmem %s3249_s25, 256 }
 0x1f2   : > { %v1046_v52 = vadd.f32 %v1044_v45, %v1030_v50  ;;  %p1922_p13 = scmp.ne.s32.totalorder %s3249_s25, %s1921_s10  ;;  %p1929_p4 = scmp.lt.s32.totalorder %s1927_s16, %s1921_s10 }
 0x1f3   : > { %v1182_v30 = vpop.permute.xlu1 %1181  ;;  %v1184_v34 = vpop.permute.xlu0 %1183 }
 0x1f4   : > { %v1777_v21 = vmul.f32 -1.442695, %v1046_v52  ;;  %v1187_v3 = vadd.f32 %v1182_v30, %v1138_v19  ;;  %v1188_v53 = vadd.f32 %v1184_v34, %v1139_v36  ;;  %p1923_p2 = pnand %p1922_p13, %p3502_p0  ;;  %p1930_p8 = por %p1929_p4, %p1928_p12 }
 0x1f6   : > { %1866 = vpow2.f32 %v1777_v21  ;;  %p1924_p5 = pneg %p1923_p2 }
 0x1f7   : > { %v1127_v0 = vpop.permute.xlu1 %1126  ;;  %v1231_v61 = vpop.permute.xlu0 %1230 }
 0x1f8   : > { %v1131_v60 = vadd.f32 %v1127_v0, %v1082_v26  ;;  %v1236_v39 = vadd.f32 %v1231_v61, %v1187_v3  ;;  %p1931_p11 = pnand %p1930_p8, %p1924_p5 }
 0x1fb   : > { %v1233_v56 = vpop.permute.xlu1 %1232  ;;  %v1159_v5 = vpop.permute.xlu0 %1158 }
 0x1fc   : > { %v1237_v42 = vadd.f32 %v1233_v56, %v1188_v53  ;;  %v1164_v44 = vadd.f32 %v1159_v5, %v1115_v18 }
 0x1ff   : > { %v1161_v17 = vpop.permute.xlu1 %1160  ;;  %v1170_v7 = vpop.permute.xlu0 %1169 }
 0x200   : > { %v1867_v55 = vpop.eup %1866  ;;  %v1165_v16 = vadd.f32 %v1161_v17, %v3501_v43  ;;  %v1172_v58 = vadd.f32 %v1170_v7, %v1130_v48  ;;  %v1173_v63 = vadd.f32 %v1170_v7, %v1131_v60 }
 0x201   : > { %v1050_v11 = vadd.f32 1.0, %v1867_v55 }
 0x203   : > { %1868 = vrcp.f32 %v1050_v11  ;;  %v1148_v31 = vpop.permute.xlu1 %1147  ;;  %v1280_v8 = vpop.permute.xlu0 %1279 }
 0x204   : > { %v1150_v33 = vadd.f32 %v1148_v31, %v1101_v62  ;;  %v1285_v41 = vadd.f32 %v1280_v8, %v1236_v39 }
 0x207   : > { %v1282_v15 = vpop.permute.xlu1 %1281  ;;  %v1208_v27 = vpop.permute.xlu0 %1207 }
 0x208   : > { %v1286_v1 = vadd.f32 %v1282_v15, %v1237_v42  ;;  %v1213_v4 = vadd.f32 %v1208_v27, %v1164_v44 }
 0x20b   : > { %v1210_v23 = vpop.permute.xlu1 %1209  ;;  %v1219_v6 = vpop.permute.xlu0 %1218 }
 0x20c   : > { %v1214_v57 = vadd.f32 %v1210_v23, %v1165_v16  ;;  %v1221_v38 = vadd.f32 %v1219_v6, %v1172_v58  ;;  %v1222_v20 = vadd.f32 %v1219_v6, %v1173_v63 }
 0x20d   : > { %v1869_v24 = vpop.eup %1868 }
 0x20e   : > { %v1053_v12 = vmul.f32 %v1869_v24, %v1046_v52 }
 0x20f   : > { %v1197_v51 = vpop.permute.xlu1 %1196  ;;  %v1329_v9 = vpop.permute.xlu0 %1328 }
 0x210   : > { %1055 = vst.msk [vmem:[%s3235_s23] sm:$0xff] %vm1054_vm7, %v1053_v12  ;;  %v1199_v49 = vadd.f32 %v1197_v51, %v1150_v33  ;;  %v1334_v47 = vadd.f32 %v1329_v9, %v1285_v41 }
 0x213   : > { %v1331_v18 = vpop.permute.xlu1 %1330  ;;  %v1253_v28 = vpop.permute.xlu0 %1252 }
 0x214   : > { %v1335_v62 = vadd.f32 %v1331_v18, %v1286_v1  ;;  %v1255_v16 = vadd.f32 %v1253_v28, %v1213_v4  ;;  %v1256_v58 = vadd.f32 %v1253_v28, %v1214_v57 }
 0x217   : > { %v1265_v32 = vpop.permute.xlu1 %1264  ;;  %v1267_v14 = vpop.permute.xlu0 %1266 }
 0x218   : > { %v1270_v15 = vadd.f32 %v1265_v32, %v1221_v38  ;;  %v1271_v23 = vadd.f32 %v1267_v14, %v1222_v20 }
 0x21b   : > { %v1246_v29 = vpop.permute.xlu1 %1245  ;;  %v1371_v35 = vpop.permute.xlu0 %1370 }
 0x21c   : > { %v1376_v0 = vadd.f32 %v1371_v35, %v1334_v47  ;;  %v1248_v51 = vadd.f32 %v1246_v29, %v1199_v49 }
 0x21f   : > { %v1373_v54 = vpop.permute.xlu1 %1372  ;;  %v1302_v25 = vpop.permute.xlu0 %1301 }
 0x220   : > { %v1377_v61 = vadd.f32 %v1373_v54, %v1335_v62  ;;  %v1304_v31 = vadd.f32 %v1302_v25, %v1255_v16  ;;  %v1305_v8 = vadd.f32 %v1302_v25, %v1256_v58 }
 0x223   : > { %v1314_v46 = vpop.permute.xlu1 %1313  ;;  %v1316_v22 = vpop.permute.xlu0 %1315 }
 0x224   : > { %v1319_v9 = vadd.f32 %v1314_v46, %v1270_v15  ;;  %v1320_v47 = vadd.f32 %v1316_v22, %v1271_v23 }
 0x227   : > { %v1295_v59 = vpop.permute.xlu1 %1294  ;;  %v1412_v50 = vpop.permute.xlu0 %1411 }
 0x228   : > { %v1414_v60 = vadd.f32 %v1412_v50, %v1376_v0  ;;  %v1415_v39 = vadd.f32 %v1412_v50, %v1377_v61  ;;  %v1297_v57 = vadd.f32 %v1295_v59, %v1248_v51 }
 0x22b   : > { %v1347_v48 = vpop.permute.xlu1 %1346  ;;  %v1349_v40 = vpop.permute.xlu0 %1348 }
 0x22c   : > { %v1352_v6 = vadd.f32 %v1347_v48, %v1304_v31  ;;  %v1353_v24 = vadd.f32 %v1349_v40, %v1305_v8 }
 0x22f   : > { %v1359_v19 = vpop.permute.xlu1 %1358  ;;  %v1361_v13 = vpop.permute.xlu0 %1360 }
 0x230   : > { %v1364_v35 = vadd.f32 %v1359_v19, %v1319_v9  ;;  %v1365_v54 = vadd.f32 %v1361_v13, %v1320_v47 }
 0x233   : > { %v1339_v36 = vpop.permute.xlu1 %1338  ;;  %v1461_v45 = vpop.permute.xlu0 %1460 }
 0x234   : > { %v1463_v42 = vadd.f32 %v1461_v45, %v1414_v60  ;;  %v1464_v44 = vadd.f32 %v1461_v45, %v1415_v39  ;;  %v1341_v38 = vadd.f32 %v1339_v36, %v1297_v57 }
 0x237   : > { %v1389_v52 = vpop.permute.xlu1 %1388  ;;  %v1391_v10 = vpop.permute.xlu0 %1390 }
 0x238   : > { %v1394_v18 = vadd.f32 %v1389_v52, %v1352_v6  ;;  %v1395_v4 = vadd.f32 %v1391_v10, %v1353_v24 }
 0x23b   : > { %v1401_v2 = vpop.permute.xlu1 %1400  ;;  %v1403_v37 = vpop.permute.xlu0 %1402 }
 0x23c   : > { %v1406_v32 = vadd.f32 %v1401_v2, %v1364_v35  ;;  %v1407_v45 = vadd.f32 %v1403_v37, %v1365_v54 }
 0x23f   : > { %v1381_v30 = vpop.permute.xlu1 %1380  ;;  %v1507_v34 = vpop.permute.xlu0 %1506 }
 0x240   : > { %v1512_v17 = vadd.f32 %v1507_v34, %v1463_v42  ;;  %v1383_v48 = vadd.f32 %v1381_v30, %v1341_v38 }
 0x243   : > { %v1509_v21 = vpop.permute.xlu1 %1508  ;;  %v1435_v3 = vpop.permute.xlu0 %1434 }
 0x244   : > { %v1513_v7 = vadd.f32 %v1509_v21, %v1464_v44  ;;  %v1440_v25 = vadd.f32 %v1435_v3, %v1394_v18 }
 0x247   : > { %v1437_v53 = vpop.permute.xlu1 %1436  ;;  %v1450_v26 = vpop.permute.xlu0 %1449 }
 0x248   : > { %v1441_v50 = vadd.f32 %v1437_v53, %v1395_v4  ;;  %v1455_v49 = vadd.f32 %v1450_v26, %v1406_v32 }
 0x24b   : > { %v1452_v56 = vpop.permute.xlu1 %1451  ;;  %v1424_v5 = vpop.permute.xlu0 %1423 }
 0x24c   : > { %v1456_v29 = vadd.f32 %v1452_v56, %v1407_v45  ;;  %v1426_v52 = vadd.f32 %v1424_v5, %v1383_v48 }
 0x24f   : > { %v1556_v55 = vpop.permute.xlu1 %1555  ;;  %v1558_v43 = vpop.permute.xlu0 %1557 }
 0x250   : > { %v1561_v63 = vadd.f32 %v1556_v55, %v1512_v17  ;;  %v1562_v11 = vadd.f32 %v1558_v43, %v1513_v7 }
 0x252   : > { %v1583_v33 = vrot.slane %v1561_v63, 2  ;;  %v1584_v41 = vrot.slane %v1562_v11, 2 }
 0x253   : > { %v1484_v27 = vpop.permute.xlu1 %1483  ;;  %v1486_v1 = vpop.permute.xlu0 %1485 }
 0x254   : > { %v1585_v12 = vsel %vm503_vm5, %v1583_v33, %v1584_v41  ;;  %v1489_v20 = vadd.f32 %v1484_v27, %v1440_v25  ;;  %v1490_v14 = vadd.f32 %v1486_v1, %v1441_v50 }
 0x257   : > { %v1495_v28 = vpop.permute.xlu1 %1494  ;;  %v1473_v62 = vpop.permute.xlu0 %1472 }
 0x258   : > { %v1497_v59 = vadd.f32 %v1495_v28, %v1455_v49  ;;  %v1498_v10 = vadd.f32 %v1495_v28, %v1456_v29  ;;  %v1475_v53 = vadd.f32 %v1473_v62, %v1426_v52 }
 0x25b   : > { %v1533_v40 = vpop.permute.xlu1 %1532  ;;  %v1535_v34 = vpop.permute.xlu0 %1534 }
 0x25c   : > { %v1538_v46 = vadd.f32 %v1533_v40, %v1489_v20  ;;  %v1539_v22 = vadd.f32 %v1535_v34, %v1490_v14 }
 0x25e   : > { %v1576_v21 = vrot.slane %v1538_v46, 2  ;;  %v1577_v19 = vrot.slane %v1539_v22, 2 }
 0x25f   : > { %v1544_v13 = vpop.permute.xlu1 %1543  ;;  %v1522_v3 = vpop.permute.xlu0 %1521 }
 0x260   : > { %v1546_v36 = vadd.f32 %v1544_v13, %v1497_v59  ;;  %v1547_v2 = vadd.f32 %v1544_v13, %v1498_v10  ;;  %v1578_v37 = vsel %vm503_vm5, %v1576_v21, %v1577_v19  ;;  %v1524_v26 = vadd.f32 %v1522_v3, %v1475_v53 }
 0x262   : > { %v1588_v30 = vadd.f32 %v1585_v12, %v1546_v36  ;;  %v1589_v0 = vadd.f32 %v1584_v41, %v1547_v2 }
 0x263   : > { %v1571_v61 = vpop.permute.xlu1 %1570 }
 0x264   : > { %v1592_v60 = vrot.slane %v1588_v30, 4  ;;  %v1593_v39 = vrot.slane %v1589_v0, 4  ;;  %v1573_v56 = vadd.f32 %v1571_v61, %v1524_v26 }
 0x266   : > { %v1580_v5 = vadd.f32 %v1578_v37, %v1573_v56  ;;  %v1594_v42 = vsel %vm163_vm2, %v1592_v60, %v1593_v39 }
 0x268   : > { %v1596_v44 = vadd.f32 %v1594_v42, %v1580_v5 }
 0x26a   : > { %v1778_v17 = vmul.f32 -1.442695, %v1596_v44 }
 0x26c   : > { %1870 = vpow2.f32 %v1778_v17 }
 0x276   : > { %v1871_v7 = vpop.eup %1870 }
 0x277   : > { %v1600_v55 = vadd.f32 1.0, %v1871_v7 }
 0x279   : > { %1872 = vrcp.f32 %v1600_v55 }
 0x283   : > { %v1873_v43 = vpop.eup %1872 }
 0x284   : > { %v1603_v16 = vmul.f32 %v1873_v43, %v1596_v44 }
 0x286   : > { %1604 = vst.msk [vmem:[%s3235_s23 + $0x8] sm:$0xff] %vm1054_vm7, %v1603_v16 }
 0x287   : > { %1934 = shalt.err (!%p1931_p11)
}
 0x288   : > { %s1935_s18 = scalar_lea.hbm %s3247_s13, 256  ;;  %s1939_s15 = scalar_lea.hbm %s3303_s3, 512 }
 0x289   : > { %p1936_p9 = scmp.ne.s32.totalorder %s3247_s13, %s1935_s18  ;;  %p1940_p6 = scmp.lt.u32.totalorder %s3247_s13, %s3303_s3 }
 0x28a   : > { %p1941_p7 = scmp.lt.u32.totalorder %s1939_s15, %s1935_s18  ;;  %p1943_p13 = scmp.lt.u32.totalorder %s1935_s18, %s3247_s13 }
 0x28b   : > { %p1937_p1 = pnand %p1936_p9, %p3502_p0 }
 0x28c   : > { %p1942_p10 = por %p1941_p7, %p1940_p6 }
 0x28d   : > { %p1938_p3 = pneg %p1937_p1 }
 0x28e   : > { %p1944_p2 = por %p1943_p13, %p1942_p10 }
 0x290   : > { %p1945_p5 = pnand %p1944_p2, %p1938_p3 }
 0x292   : > { %1948 = shalt.err (!%p1945_p5)
}
 0x293   : > { %s2025_s4 = smov 128   ;;  %s2026_s14 = smov 8  }
 0x294   : > { %1788 = dma.vmem_to_hbm [thread:$0]  (%p3502_p0), %s3249_s25, 256, %s3247_s13, %s1606_s28, %s2025_s4, %s2025_s4, %s2026_s14  }
 0x295 PF: > { %s1634_s17 = sand.u32 1, %s1985_s0   ;;  %p3503_p12 = scmp.ne.s32.totalorder %s3371_s5, 0 }
 0x296   : > { %p3504_p4 = scmp.ge.s32.totalorder %s2005_s22, 2  ;;  %s1635_s2 = scalar_lea.sflag [#allocation9], %s1634_s17 }
 0x298   : > { %p1795_p8 = pnand %p3504_p4, %p3503_p12 }
 0x29a   : > { %1980 = dma.done.wait (!%p1795_p8), %s1635_s2, 256  }
 0x29b   : > { %1982 = vsyncadd (!%p1795_p8), %s1635_s2, 4294967040  ;;  %s26_s22 = sadd.s32 1, %s2005_s22   ;;  %s3505_s26 = sld [smem:[#allocation16_spill]] }
 0x29c   : > { %p23_p11 = scmp.ge.s32.totalorder %s26_s22, 4   ;;  %s3506_s20 = sld [smem:[#allocation14_spill]] }
 0x29d   : > { %s3507_s21 = sld [smem:[#allocation15_spill]]  ;;  %s3508_s0 = smov %s1989_s1 }
 0x29e   : > { %s3509_s1 = smov %s1993_s19  ;;  %25 = sbr.rel (!%p23_p11) target bundleno = 22 (0x16), region = 81 }
 0x2a1   : > { %s3510_s19 = smov %s3505_s26 }
 0x2a5   :  { %1640 = vsyncpa [#allocation8], 1 }
 0x2a6   :  { %1642 = vsyncpa [#allocation8 + $0x1], 1 }
 0x2a7   :  { %1643 = vsyncpa [#allocation9], 1 }
 0x2a8   :  { %1645 = vsyncpa [#allocation9 + $0x1], 1 }

</bundles_post_ra>
